<compile_context>
chip_gen: v6e
topology: v6e:2x2x1
jax: 0.10.0
libtpu: 0.0.40
codegen_flags: <defaults>
</compile_context>

<pallas_src>
import functools
import math

import jax
import jax.numpy as jnp
from jax.experimental import pallas as pl
from jax.experimental.pallas import tpu as pltpu


# --------------------------- hardware query -----------------------------------


def _vmem_capacity_bytes():
    """Physical VMEM per TensorCore; conservative 64 MiB (v7x) fallback."""
    try:
        info = pltpu.get_tpu_info()
        for attr in ("vmem_capacity_bytes", "vmem_size_bytes", "vmem_bytes"):
            v = getattr(info, attr, None)
            if v and (16 << 20) <= int(v) <= (1 << 30):
                return int(v)
    except Exception:
        pass
    return 64 << 20


_VMEM_CAP = _vmem_capacity_bytes()


# ------------------------------- kernels --------------------------------------


def _pool_kernel(x_ref, colsum_ref):
    # x_ref: (1, rB, L) input tile; colsum_ref: (1, 1, L) f32 accumulator that
    # stays resident across the (last, "arbitrary") row-tile grid axis.
    @pl.when(pl.program_id(1) == 0)
    def _():
        colsum_ref[...] = jnp.zeros_like(colsum_ref)

    colsum_ref[...] += jnp.sum(
        x_ref[...].astype(jnp.float32), axis=1, keepdims=True)


def _scale_kernel(x_ref, g_ref, o_ref):
    # x_ref/o_ref: (1, rB, L); g_ref: (1, 1, L) gate row (already x.dtype),
    # broadcast over sublanes.  Pure streaming multiply.
    o_ref[...] = (x_ref[...] * g_ref[...]).astype(o_ref.dtype)


def _fused_kernel(x_ref, w0t_ref, b0_ref, w1t_ref, b1_ref, o_ref, *, C, S):
    # Whole-batch slab resident: pool + excitation + scale in one pass.
    x = x_ref[...]                                        # (1, R, L)
    L = x.shape[-1]
    colsum = jnp.sum(x.astype(jnp.float32), axis=1)       # (1, L)

    # Channel gather / scatter via tiny selection matmuls (channel = lane % C);
    # avoids lane<->sublane reshapes inside the kernel.
    lane_g = jax.lax.broadcasted_iota(jnp.int32, (L, C), 0) % C
    ch_g = jax.lax.broadcasted_iota(jnp.int32, (L, C), 1)
    gather = (lane_g == ch_g).astype(jnp.float32)          # (L, C)
    mean = jnp.dot(colsum, gather,
                   preferred_element_type=jnp.float32) / jnp.float32(S)  # (1, C)

    w0t = w0t_ref[...].astype(jnp.float32)
    b0 = b0_ref[...].astype(jnp.float32)
    w1t = w1t_ref[...].astype(jnp.float32)
    b1 = b1_ref[...].astype(jnp.float32)
    h = jnp.maximum(
        jnp.dot(mean, w0t, preferred_element_type=jnp.float32) + b0, 0.0)
    gate = jax.nn.sigmoid(
        jnp.dot(h, w1t, preferred_element_type=jnp.float32) + b1)        # (1, C)

    ch_s = jax.lax.broadcasted_iota(jnp.int32, (C, L), 0)
    lane_s = jax.lax.broadcasted_iota(jnp.int32, (C, L), 1) % C
    scatter = (ch_s == lane_s).astype(jnp.float32)          # (C, L)
    gate_row = jnp.dot(gate, scatter,
                       preferred_element_type=jnp.float32)  # (1, L)

    o_ref[...] = (x * gate_row[:, None, :].astype(x.dtype)).astype(o_ref.dtype)


# --------------------------- tiling helpers ------------------------------------


def _pick_lane_width(flat, c, max_lane):
    """Lane width L of the (B, R, L) view: largest divisor of `flat` that is a
    multiple of C and <= max_lane, preferring multiples of lcm(C, 128)
    (fully lane-dense).  Falls back to C (always divides flat)."""
    base = (c * 128) // math.gcd(c, 128)
    best_any = None
    best_aligned = None
    d = c
    while d <= max_lane:
        if flat % d == 0:
            best_any = d
            if d % base == 0:
                best_aligned = d
        d += c
    if best_aligned is not None:
        return best_aligned
    if best_any is not None:
        return best_any
    return c


def _pick_row_block(rows, lane_bytes, block_bytes, sublane):
    """Largest rB dividing rows, multiple of the native sublane tile, with
    rB * lane_bytes <= block_bytes."""
    cap = max(1, block_bytes // lane_bytes)
    best = None
    r = sublane
    while r <= min(rows, cap):
        if rows % r == 0:
            best = r
        r += sublane
    if best is not None:
        return best
    # No sublane-aligned divisor fits the budget; a partial block would break
    # the (sublane, 128) tiling constraint, so take the full row dim.
    # TODO(synk): pad rows to a multiple of `sublane` instead of taking the
    # whole slab for awkward, non-aligned shapes.
    return rows


# -------------------------------- wrapper ---------------------------------------


@functools.partial(
    jax.jit, static_argnames=("max_lane", "target_block_bytes", "allow_fused"))
def ca_layer(x, w0, b0, w1, b1, *, max_lane=2048,
             target_block_bytes=4 << 20, allow_fused=True):
    """x: (B, D, H, W, C). w0: (C//r, C), b0: (C//r,), w1: (C, C//r), b1: (C,)."""
    B, D, H, W, C = x.shape
    Cr = w0.shape[0]
    S = D * H * W
    F = S * C
    elem = x.dtype.itemsize
    sublane = max(8, 32 // elem)          # 8 f32 / 16 bf16 / 32 int8-fp8

    L = _pick_lane_width(F, C, max_lane)
    R = F // L
    xv = x.reshape(B, R, L)               # contiguous regrouping, no data movement

    cap = _VMEM_CAP
    budget = int(cap * 0.7)
    slab_bytes = R * L * elem
    weight_bytes = 4 * (2 * C * Cr + C + Cr) + 8 * L * C  # weights + selection mats

    # ---------------- fused single-pass path (slab resident in VMEM) ----------
    fused_need = 4 * slab_bytes + weight_bytes + (1 << 20)   # 2x dbl-buffered in+out
    if allow_fused and fused_need <= budget:
        w0t = jnp.transpose(w0)            # (C, Cr)
        w1t = jnp.transpose(w1)            # (Cr, C)
        b0r = b0.reshape(1, Cr)
        b1r = b1.reshape(1, C)
        vmem_fused = int(min(cap, max(fused_need + (2 << 20), 32 << 20)))
        out = pl.pallas_call(
            functools.partial(_fused_kernel, C=C, S=S),
            out_shape=jax.ShapeDtypeStruct((B, R, L), x.dtype),
            grid_spec=pltpu.PrefetchScalarGridSpec(
                num_scalar_prefetch=0,
                grid=(B,),
                in_specs=[
                    pl.BlockSpec((1, R, L), lambda b: (b, 0, 0)),
                    pl.BlockSpec((C, Cr), lambda b: (0, 0)),
                    pl.BlockSpec((1, Cr), lambda b: (0, 0)),
                    pl.BlockSpec((Cr, C), lambda b: (0, 0)),
                    pl.BlockSpec((1, C), lambda b: (0, 0)),
                ],
                out_specs=pl.BlockSpec((1, R, L), lambda b: (b, 0, 0)),
            ),
            compiler_params=pltpu.CompilerParams(
                dimension_semantics=("parallel",),
                vmem_limit_bytes=vmem_fused),
            cost_estimate=pl.CostEstimate(
                flops=2 * B * F + 4 * B * C * Cr,
                transcendentals=B * C,
                bytes_accessed=2 * B * F * elem + weight_bytes),
        )(xv, w0t, b0r, w1t, b1r)
        return out.reshape(B, D, H, W, C)

    # ---------------- two-pass streaming path ---------------------------------
    # Pool streams only x (tiny resident output) -> 2x the scale pass's block.
    scale_block_target = min(target_block_bytes, budget // 4)
    pool_block_target = min(2 * target_block_bytes, budget // 2)

    # Split the pool rows across an extra leading "parallel" factor so both
    # v7x TensorCores get work even when B is 1 (neutral on v5e/v6e).
    split = 2 if (R % 2 == 0 and R >= 2 * sublane) else 1
    rows_pool = R // split
    rB_pool = _pick_row_block(rows_pool, L * elem, pool_block_target, sublane)
    nR_pool = rows_pool // rB_pool
    xp = xv.reshape(B * split, rows_pool, L)

    vmem_pool = int(min(cap, max(2 * rB_pool * L * elem + 4 * L * 4 + (1 << 20),
                                 32 << 20)))
    colsum = pl.pallas_call(
        _pool_kernel,
        out_shape=jax.ShapeDtypeStruct((B * split, 1, L), jnp.float32),
        grid_spec=pltpu.PrefetchScalarGridSpec(
            num_scalar_prefetch=0,
            grid=(B * split, nR_pool),
            in_specs=[pl.BlockSpec((1, rB_pool, L), lambda b, r: (b, r, 0))],
            out_specs=pl.BlockSpec((1, 1, L), lambda b, r: (b, 0, 0)),
        ),
        compiler_params=pltpu.CompilerParams(
            dimension_semantics=("parallel", "arbitrary"),
            vmem_limit_bytes=vmem_pool),
        cost_estimate=pl.CostEstimate(
            flops=B * F, transcendentals=0,
            bytes_accessed=B * F * elem + B * split * L * 4),
    )(xp)

    # Tiny excitation hoisted to plain JAX on the pooled (B, C) tensor.
    mean = jnp.sum(colsum.reshape(B, split * (L // C), C), axis=1) / jnp.float32(S)
    h = jnp.maximum(mean @ w0.astype(jnp.float32).T + b0.astype(jnp.float32), 0.0)
    gate = jax.nn.sigmoid(h @ w1.astype(jnp.float32).T + b1.astype(jnp.float32))
    # Lane-dense gate row, pre-cast to x.dtype so pass 2 stays in one dtype.
    gate_row = jnp.tile(gate, (1, L // C)).reshape(B, 1, L).astype(x.dtype)

    rB_scale = _pick_row_block(R, L * elem, scale_block_target, sublane)
    nR_scale = R // rB_scale
    vmem_scale = int(min(cap, max(4 * rB_scale * L * elem + 2 * L * elem + (1 << 20),
                                  32 << 20)))
    # Note: pass input_output_aliases={0: 0} here if the caller can donate x.
    out = pl.pallas_call(
        _scale_kernel,
        out_shape=jax.ShapeDtypeStruct((B, R, L), x.dtype),
        grid_spec=pltpu.PrefetchScalarGridSpec(
            num_scalar_prefetch=0,
            grid=(B, nR_scale),
            in_specs=[
                pl.BlockSpec((1, rB_scale, L), lambda b, r: (b, r, 0)),
                pl.BlockSpec((1, 1, L), lambda b, r: (b, 0, 0)),
            ],
            out_specs=pl.BlockSpec((1, rB_scale, L), lambda b, r: (b, r, 0)),
        ),
        compiler_params=pltpu.CompilerParams(
            dimension_semantics=("parallel", "parallel"),
            vmem_limit_bytes=vmem_scale),
        cost_estimate=pl.CostEstimate(
            flops=B * F, transcendentals=0,
            bytes_accessed=2 * B * F * elem + B * L * elem),
    )(xv, gate_row)

    return out.reshape(B, D, H, W, C)


# ------------------------------- reference --------------------------------------


def ca_layer_ref(x, w0, b0, w1, b1):
    """Pure-JAX reference mirroring the PyTorch forward."""
    xm = jnp.mean(x, axis=(1, 2, 3))                 # (B, C)
    h = jnp.maximum(xm @ w0.T + b0, 0.0)             # (B, C//r)
    w = jax.nn.sigmoid(h @ w1.T + b1)                # (B, C)
    return x * w[:, None, None, None, :]


# ---------------------------------- main -----------------------------------------


if __name__ == "__main__":

    def _run_case(key, B, D, H, W, C, reduction, **kwargs):
        Cr = max(C // reduction, 1)
        kx, k0, kb0, k1, kb1 = jax.random.split(key, 5)
        x = jax.random.normal(kx, (B, D, H, W, C), dtype=jnp.float32)
        w0 = jax.random.normal(k0, (Cr, C), dtype=jnp.float32) * 0.1
        b0 = jax.random.normal(kb0, (Cr,), dtype=jnp.float32) * 0.1
        w1 = jax.random.normal(k1, (C, Cr), dtype=jnp.float32) * 0.1
        b1 = jax.random.normal(kb1, (C,), dtype=jnp.float32) * 0.1

        out = jax.block_until_ready(ca_layer(x, w0, b0, w1, b1, **kwargs))
        ref = ca_layer_ref(x, w0, b0, w1, b1)
        assert out.shape == x.shape
        assert jnp.allclose(out, ref, atol=1e-5, rtol=1e-5), (B, D, H, W, C)

    key = jax.random.PRNGKey(0)
    k = jax.random.split(key, 4)

    # 1) fused single-pass resident path (default, lane-dense L).
    _run_case(k[0], 2, 8, 16, 16, 8, 4)
    # 2) forced two-pass streaming path: multi-step pool accumulation,
    #    megacore row split, and a tiled scale pass.
    _run_case(k[1], 2, 8, 16, 16, 8, 4,
              allow_fused=False, max_lane=128, target_block_bytes=8192)
    # 3) awkward C (lcm(C,128) does not divide S*C): widened lane fallback, fused.
    _run_case(k[2], 2, 5, 5, 5, 6, 2)
    # 4) awkward C on the two-pass streaming path.
    _run_case(k[3], 2, 5, 5, 5, 6, 2, allow_fused=False)

    print("KERNEL_OK")
</pallas_src>

<mosaic_0001>
module attributes {stable_mosaic.version = 11 : i64} {
  func.func @_fused_kernel(%arg0: i32, %arg1: memref<1x8x2048xf32, #tpu.memory_space<vmem>>, %arg2: memref<8x2xf32, #tpu.memory_space<vmem>>, %arg3: memref<1x2xf32, #tpu.memory_space<vmem>>, %arg4: memref<2x8xf32, #tpu.memory_space<vmem>>, %arg5: memref<1x8xf32, #tpu.memory_space<vmem>>, %arg6: memref<1x8x2048xf32, #tpu.memory_space<vmem>>) attributes {dimension_semantics = [#tpu.dimension_semantics<parallel>], iteration_bounds = array<i64: 2>, scalar_prefetch = 0 : i64, scratch_operands = 0 : i64, tpu.core_type = #tpu.core_type<tc>, window_params = [{transform_indices = @transform_0, window_bounds = array<i64: 1, 8, 2048>}, {pipeline_mode = #tpu.pipeline_mode<synchronous>, transform_indices = @transform_1, window_bounds = array<i64: 8, 2>}, {pipeline_mode = #tpu.pipeline_mode<synchronous>, transform_indices = @transform_2, window_bounds = array<i64: 1, 2>}, {pipeline_mode = #tpu.pipeline_mode<synchronous>, transform_indices = @transform_3, window_bounds = array<i64: 2, 8>}, {pipeline_mode = #tpu.pipeline_mode<synchronous>, transform_indices = @transform_4, window_bounds = array<i64: 1, 8>}, {transform_indices = @transform_5, window_bounds = array<i64: 1, 8, 2048>}]} {
    %c0 = arith.constant 0 : index
    %c0_0 = arith.constant 0 : index
    %c0_1 = arith.constant 0 : index
    %0 = vector.load %arg1[%c0, %c0_0, %c0_1] : memref<1x8x2048xf32, #tpu.memory_space<vmem>>, vector<1x8x2048xf32>
    %cst = arith.constant dense<0.000000e+00> : vector<1x2048xf32>
    %1 = vector.multi_reduction <add>, %0, %cst [1] : vector<1x8x2048xf32> to vector<1x2048xf32>
    %2 = tpu.iota {dimensions = array<i32: 0>} : vector<2048x8xi32>
    %c8_i32 = arith.constant 8 : i32
    %c0_i32 = arith.constant 0 : i32
    %3 = arith.cmpi eq, %c8_i32, %c0_i32 : i32
    %c1_i32 = arith.constant 1 : i32
    %4 = arith.select %3, %c1_i32, %c8_i32 : i32
    %5 = vector.broadcast %4 : i32 to vector<2048x8xi32>
    %6 = arith.remsi %2, %5 : vector<2048x8xi32>
    %c0_i32_2 = arith.constant 0 : i32
    %7 = vector.broadcast %c0_i32_2 : i32 to vector<2048x8xi32>
    %8 = arith.cmpi ne, %6, %7 : vector<2048x8xi32>
    %c0_i32_3 = arith.constant 0 : i32
    %9 = vector.broadcast %c0_i32_3 : i32 to vector<2048x8xi32>
    %10 = arith.cmpi slt, %6, %9 : vector<2048x8xi32>
    %c0_i32_4 = arith.constant 0 : i32
    %11 = arith.cmpi slt, %4, %c0_i32_4 : i32
    %12 = vector.broadcast %11 : i1 to vector<2048x8xi1>
    %13 = vector.broadcast %12 : vector<2048x8xi1> to vector<2048x8xi1>
    %14 = arith.xori %10, %13 : vector<2048x8xi1>
    %15 = arith.andi %14, %8 : vector<2048x8xi1>
    %16 = vector.broadcast %4 : i32 to vector<2048x8xi32>
    %17 = arith.addi %6, %16 : vector<2048x8xi32>
    %18 = arith.select %15, %17, %6 : vector<2048x8xi1>, vector<2048x8xi32>
    %19 = tpu.iota {dimensions = array<i32: 1>} : vector<2048x8xi32>
    %20 = arith.cmpi eq, %18, %19 : vector<2048x8xi32>
    %21 = arith.extui %20 : vector<2048x8xi1> to vector<2048x8xi32>
    %22 = arith.sitofp %21 : vector<2048x8xi32> to vector<2048x8xf32>
    %cst_5 = arith.constant dense<0.000000e+00> : vector<1x8xf32>
    %23 = tpu.matmul %1, %22, %cst_5 {dimension_numbers = #tpu.dot_dimension_numbers<[1], [0], [0], [1], [0, 0, 1, 1], [], []>} : vector<1x2048xf32>, vector<2048x8xf32>, vector<1x8xf32> -> vector<1x8xf32>
    %cst_6 = arith.constant 2.048000e+03 : f32
    %24 = vector.broadcast %cst_6 : f32 to vector<1x8xf32>
    %25 = arith.divf %23, %24 : vector<1x8xf32>
    %c0_7 = arith.constant 0 : index
    %c0_8 = arith.constant 0 : index
    %26 = vector.load %arg2[%c0_7, %c0_8] : memref<8x2xf32, #tpu.memory_space<vmem>>, vector<8x2xf32>
    %c0_9 = arith.constant 0 : index
    %c0_10 = arith.constant 0 : index
    %27 = vector.load %arg3[%c0_9, %c0_10] : memref<1x2xf32, #tpu.memory_space<vmem>>, vector<1x2xf32>
    %c0_11 = arith.constant 0 : index
    %c0_12 = arith.constant 0 : index
    %28 = vector.load %arg4[%c0_11, %c0_12] : memref<2x8xf32, #tpu.memory_space<vmem>>, vector<2x8xf32>
    %c0_13 = arith.constant 0 : index
    %c0_14 = arith.constant 0 : index
    %29 = vector.load %arg5[%c0_13, %c0_14] : memref<1x8xf32, #tpu.memory_space<vmem>>, vector<1x8xf32>
    %cst_15 = arith.constant dense<0.000000e+00> : vector<1x2xf32>
    %30 = tpu.matmul %25, %26, %cst_15 {dimension_numbers = #tpu.dot_dimension_numbers<[1], [0], [0], [1], [0, 0, 1, 1], [], []>} : vector<1x8xf32>, vector<8x2xf32>, vector<1x2xf32> -> vector<1x2xf32>
    %31 = arith.addf %30, %27 : vector<1x2xf32>
    %cst_16 = arith.constant 0.000000e+00 : f32
    %32 = vector.broadcast %cst_16 : f32 to vector<1x2xf32>
    %33 = arith.maximumf %31, %32 : vector<1x2xf32>
    %cst_17 = arith.constant dense<0.000000e+00> : vector<1x8xf32>
    %34 = tpu.matmul %33, %28, %cst_17 {dimension_numbers = #tpu.dot_dimension_numbers<[1], [0], [0], [1], [0, 0, 1, 1], [], []>} : vector<1x2xf32>, vector<2x8xf32>, vector<1x8xf32> -> vector<1x8xf32>
    %35 = arith.addf %34, %29 : vector<1x8xf32>
    %36 = arith.negf %35 : vector<1x8xf32>
    %37 = math.exp %36 : vector<1x8xf32>
    %cst_18 = arith.constant 1.000000e+00 : f32
    %38 = vector.broadcast %cst_18 : f32 to vector<1x8xf32>
    %39 = arith.addf %38, %37 : vector<1x8xf32>
    %40 = arith.divf %38, %39 : vector<1x8xf32>
    %41 = tpu.iota {dimensions = array<i32: 0>} : vector<8x2048xi32>
    %42 = tpu.iota {dimensions = array<i32: 1>} : vector<8x2048xi32>
    %c8_i32_19 = arith.constant 8 : i32
    %c0_i32_20 = arith.constant 0 : i32
    %43 = arith.cmpi eq, %c8_i32_19, %c0_i32_20 : i32
    %c1_i32_21 = arith.constant 1 : i32
    %44 = arith.select %43, %c1_i32_21, %c8_i32_19 : i32
    %45 = vector.broadcast %44 : i32 to vector<8x2048xi32>
    %46 = arith.remsi %42, %45 : vector<8x2048xi32>
    %c0_i32_22 = arith.constant 0 : i32
    %47 = vector.broadcast %c0_i32_22 : i32 to vector<8x2048xi32>
    %48 = arith.cmpi ne, %46, %47 : vector<8x2048xi32>
    %c0_i32_23 = arith.constant 0 : i32
    %49 = vector.broadcast %c0_i32_23 : i32 to vector<8x2048xi32>
    %50 = arith.cmpi slt, %46, %49 : vector<8x2048xi32>
    %c0_i32_24 = arith.constant 0 : i32
    %51 = arith.cmpi slt, %44, %c0_i32_24 : i32
    %52 = vector.broadcast %51 : i1 to vector<8x2048xi1>
    %53 = vector.broadcast %52 : vector<8x2048xi1> to vector<8x2048xi1>
    %54 = arith.xori %50, %53 : vector<8x2048xi1>
    %55 = arith.andi %54, %48 : vector<8x2048xi1>
    %56 = vector.broadcast %44 : i32 to vector<8x2048xi32>
    %57 = arith.addi %46, %56 : vector<8x2048xi32>
    %58 = arith.select %55, %57, %46 : vector<8x2048xi1>, vector<8x2048xi32>
    %59 = arith.cmpi eq, %41, %58 : vector<8x2048xi32>
    %60 = arith.extui %59 : vector<8x2048xi1> to vector<8x2048xi32>
    %61 = arith.sitofp %60 : vector<8x2048xi32> to vector<8x2048xf32>
    %cst_25 = arith.constant dense<0.000000e+00> : vector<1x2048xf32>
    %62 = tpu.matmul %40, %61, %cst_25 {dimension_numbers = #tpu.dot_dimension_numbers<[1], [0], [0], [1], [0, 0, 1, 1], [], []>} : vector<1x8xf32>, vector<8x2048xf32>, vector<1x2048xf32> -> vector<1x2048xf32>
    %63 = vector.shape_cast %62 : vector<1x2048xf32> to vector<1x1x2048xf32>
    %64 = vector.broadcast %63 : vector<1x1x2048xf32> to vector<1x8x2048xf32>
    %65 = arith.mulf %0, %64 : vector<1x8x2048xf32>
    %c0_26 = arith.constant 0 : index
    %c0_27 = arith.constant 0 : index
    %c0_28 = arith.constant 0 : index
    %66 = vector.load %arg6[%c0_26, %c0_27, %c0_28] : memref<1x8x2048xf32, #tpu.memory_space<vmem>>, vector<1x8x2048xf32>
    tpu.vector_store %arg6[%c0_26, %c0_27, %c0_28], %65 {strides = array<i32>} : memref<1x8x2048xf32, #tpu.memory_space<vmem>>, vector<1x8x2048xf32>,
    return
  }
  func.func @transform_0(%arg0: i32) -> (i32, i32, i32) {
    %c0_i32 = arith.constant 0 : i32
    %c0_i32_0 = arith.constant 0 : i32
    %c0_i32_1 = arith.constant 0 : i32
    return %arg0, %c0_i32, %c0_i32_0 : i32, i32, i32
  }
  func.func @transform_1(%arg0: i32) -> (i32, i32) {
    %c0_i32 = arith.constant 0 : i32
    %c0_i32_0 = arith.constant 0 : i32
    %c0_i32_1 = arith.constant 0 : i32
    return %c0_i32, %c0_i32_0 : i32, i32
  }
  func.func @transform_2(%arg0: i32) -> (i32, i32) {
    %c0_i32 = arith.constant 0 : i32
    %c0_i32_0 = arith.constant 0 : i32
    %c0_i32_1 = arith.constant 0 : i32
    return %c0_i32, %c0_i32_0 : i32, i32
  }
  func.func @transform_3(%arg0: i32) -> (i32, i32) {
    %c0_i32 = arith.constant 0 : i32
    %c0_i32_0 = arith.constant 0 : i32
    %c0_i32_1 = arith.constant 0 : i32
    return %c0_i32, %c0_i32_0 : i32, i32
  }
  func.func @transform_4(%arg0: i32) -> (i32, i32) {
    %c0_i32 = arith.constant 0 : i32
    %c0_i32_0 = arith.constant 0 : i32
    %c0_i32_1 = arith.constant 0 : i32
    return %c0_i32, %c0_i32_0 : i32, i32
  }
  func.func @transform_5(%arg0: i32) -> (i32, i32, i32) {
    %c0_i32 = arith.constant 0 : i32
    %c0_i32_0 = arith.constant 0 : i32
    %c0_i32_1 = arith.constant 0 : i32
    return %arg0, %c0_i32, %c0_i32_0 : i32, i32, i32
  }
}

</mosaic_0001>

<bundles_post_ra>
// kernel: ca_layer.1
= control target key start
LH: loop header
LB: loop body
LE: loop exit
PB: predicated region body
PF: predicated region fallthrough
CT: control target
= control target key end

     0   :  { %s7068_s18 = smov 0   ;;  %s8148_s0 = inlined_call_operand.vmem [shape: f32[2,8,2048], index: 0, kind: input, shape index: {}]   ;;  %s8149_s1 = inlined_call_operand.vmem [shape: f32[8,2], index: 1, kind: input, shape index: {}]   ;;  %s8150_s2 = inlined_call_operand.vmem [shape: f32[1,2], index: 2, kind: input, shape index: {}]   ;;  %s8151_s3 = inlined_call_operand.vmem [shape: f32[2,8], index: 3, kind: input, shape index: {}]   ;;  %s8152_s4 = inlined_call_operand.vmem [shape: f32[1,8], index: 4, kind: input, shape index: {}]   ;;  %s8153_s5 = inlined_call_operand.vmem [shape: f32[2,8,2048], index: 5, kind: output, shape index: {}]  }
   0x1 LB: > { %s6138_s19 = sadd.s32 4294967295, %s7033_s18   ;;  %p6142_p0 = scmp.ge.s32.totalorder %s7033_s18, 1  ;;  %s7033_s18 = sphi %s7068_s18, %s15_s18  }
   0x2   : > { %p187_p1 = scmp.lt.s32.totalorder %s7033_s18, 3 }
   0x4   : > { %p188_p2 = pnand %p6142_p0, %p187_p1 }
   0x5   : > { %p7187_p3 = scmp.lt.s32.totalorder (!%p188_p2), %s6138_s19, 1 }
   0x6   : > { %191 = sbr.rel (%p188_p2) target bundleno = 1076 (0x434), region = 40 }
   0xb   : > { %v337_v0 = vlaneseq  ;;  %v7035_v19 = vmov 1.0   ;;  %s8190_s19 = smov (!%p7187_p3, %s6138_s19), 1 }
   0xc   : > { %s6705_s21 = sshll.u32 %s8190_s19, 7 }
   0xd   : > { %v7076_v1 = vshrl.u32 %v337_v0, 7  ;;  %v7078_v2 = vand.u32 127, %v337_v0  ;;  %s7250_s24 = scalar_lea.vmem %s8148_s0, %s6705_s21  ;;  %s8097_s10 = scalar_lea.vmem %s8153_s5, %s6705_s21 }
   0xf   : > { %v369_v3 = vadd.s32 248, %v7076_v1  ;;  %v401_v4 = vadd.s32 504, %v7076_v1  ;;  %v353_v5 = vadd.s32 120, %v7076_v1  ;;  %v385_v6 = vadd.s32 376, %v7076_v1 }
  0x10   : > { %v368_v7 = vadd.s32 240, %v7076_v1  ;;  %v400_v8 = vadd.s32 496, %v7076_v1  ;;  %v352_v9 = vadd.s32 112, %v7076_v1  ;;  %v384_v10 = vadd.s32 368, %v7076_v1 }
  0x11   : > { %v815_v11 = vand.u32 7, %v369_v3  ;;  %v1039_v12 = vand.u32 7, %v401_v4  ;;  %v703_v13 = vand.u32 7, %v353_v5  ;;  %v927_v14 = vand.u32 7, %v385_v6 }
  0x12   : > { %v808_v15 = vand.u32 7, %v368_v7  ;;  %v1032_v16 = vand.u32 7, %v400_v8  ;;  %v696_v17 = vand.u32 7, %v352_v9  ;;  %v920_v18 = vand.u32 7, %v384_v10 }
  0x13   : > { %vm3699_vm0 = vcmp.eq.s32.totalorder %v815_v11, %v7078_v2  ;;  %vm3731_vm1 = vcmp.eq.s32.totalorder %v1039_v12, %v7078_v2  ;;  %vm3683_vm2 = vcmp.eq.s32.totalorder %v703_v13, %v7078_v2  ;;  %vm3715_vm3 = vcmp.eq.s32.totalorder %v927_v14, %v7078_v2 }
  0x14   : > { %6707 = vmatprep.subr.msk.mxu0 %vm3699_vm0, %v7035_v19  ;;  %6742 = vmatprep.subr.msk.mxu1 %vm3731_vm1, %v7035_v19  ;;  %vm3698_vm4 = vcmp.eq.s32.totalorder %v808_v15, %v7078_v2  ;;  %vm3730_vm5 = vcmp.eq.s32.totalorder %v1032_v16, %v7078_v2  ;;  %vm3682_vm6 = vcmp.eq.s32.totalorder %v696_v17, %v7078_v2  ;;  %v367_v20 = vadd.s32 232, %v7076_v1 }
  0x15   : > { %6708 = vmatpush3.msk.msra.mxu0 %vm3683_vm2, %v7035_v19  ;;  %6743 = vmatpush3.msk.msra.mxu1 %vm3715_vm3, %v7035_v19  ;;  %vm3714_vm7 = vcmp.eq.s32.totalorder %v920_v18, %v7078_v2  ;;  %v399_v21 = vadd.s32 488, %v7076_v1  ;;  %v351_v22 = vadd.s32 104, %v7076_v1  ;;  %v383_v23 = vadd.s32 360, %v7076_v1 }
  0x16   : > { %6709 = vmatprep.subr.msk.mxu0 %vm3698_vm4, %v7035_v19  ;;  %6744 = vmatprep.subr.msk.mxu1 %vm3730_vm5, %v7035_v19  ;;  %v801_v24 = vand.u32 7, %v367_v20  ;;  %v366_v25 = vadd.s32 224, %v7076_v1  ;;  %v398_v26 = vadd.s32 480, %v7076_v1  ;;  %v350_v27 = vadd.s32 96, %v7076_v1 }
  0x17   : > { %6710 = vmatpush3.msk.msra.mxu0 %vm3682_vm6, %v7035_v19  ;;  %6745 = vmatpush3.msk.msra.mxu1 %vm3714_vm7, %v7035_v19  ;;  %v1025_v28 = vand.u32 7, %v399_v21  ;;  %v689_v29 = vand.u32 7, %v351_v22  ;;  %v913_v30 = vand.u32 7, %v383_v23  ;;  %v382_v31 = vadd.s32 352, %v7076_v1 }
  0x18   : > { %vm3697_vm8 = vcmp.eq.s32.totalorder %v801_v24, %v7078_v2  ;;  %v794_v32 = vand.u32 7, %v366_v25  ;;  %v1018_v33 = vand.u32 7, %v398_v26  ;;  %v682_v34 = vand.u32 7, %v350_v27 }
  0x19   : > { %6711 = vmatprep.subr.msk.mxu0 %vm3697_vm8, %v7035_v19  ;;  %vm3729_vm9 = vcmp.eq.s32.totalorder %v1025_v28, %v7078_v2  ;;  %vm3681_vm10 = vcmp.eq.s32.totalorder %v689_v29, %v7078_v2  ;;  %vm3713_vm11 = vcmp.eq.s32.totalorder %v913_v30, %v7078_v2  ;;  %v906_v35 = vand.u32 7, %v382_v31 }
  0x1a   : > { %6746 = vmatprep.subr.msk.mxu1 %vm3729_vm9, %v7035_v19  ;;  %6712 = vmatpush3.msk.msra.mxu0 %vm3681_vm10, %v7035_v19  ;;  %vm3696_vm12 = vcmp.eq.s32.totalorder %v794_v32, %v7078_v2  ;;  %vm3728_vm13 = vcmp.eq.s32.totalorder %v1018_v33, %v7078_v2  ;;  %vm3680_vm14 = vcmp.eq.s32.totalorder %v682_v34, %v7078_v2  ;;  %v365_v36 = vadd.s32 216, %v7076_v1 }
  0x1b   : > { %6747 = vmatpush3.msk.msra.mxu1 %vm3713_vm11, %v7035_v19  ;;  %6713 = vmatprep.subr.msk.mxu0 %vm3696_vm12, %v7035_v19  ;;  %vm3712_vm15 = vcmp.eq.s32.totalorder %v906_v35, %v7078_v2  ;;  %v397_v37 = vadd.s32 472, %v7076_v1  ;;  %v349_v38 = vadd.s32 88, %v7076_v1  ;;  %v381_v39 = vadd.s32 344, %v7076_v1 }
  0x1c   : > { %6748 = vmatprep.subr.msk.mxu1 %vm3728_vm13, %v7035_v19  ;;  %6714 = vmatpush3.msk.msra.mxu0 %vm3680_vm14, %v7035_v19  ;;  %v787_v40 = vand.u32 7, %v365_v36  ;;  %v364_v41 = vadd.s32 208, %v7076_v1  ;;  %v396_v42 = vadd.s32 464, %v7076_v1  ;;  %v348_v43 = vadd.s32 80, %v7076_v1 }
  0x1d   : > { %6749 = vmatpush3.msk.msra.mxu1 %vm3712_vm15, %v7035_v19  ;;  %v1011_v44 = vand.u32 7, %v397_v37  ;;  %v675_v45 = vand.u32 7, %v349_v38  ;;  %v899_v46 = vand.u32 7, %v381_v39  ;;  %v380_v47 = vadd.s32 336, %v7076_v1 }
  0x1e   : > { %vm3695_vm0 = vcmp.eq.s32.totalorder %v787_v40, %v7078_v2  ;;  %v780_v48 = vand.u32 7, %v364_v41  ;;  %v1004_v49 = vand.u32 7, %v396_v42  ;;  %v668_v50 = vand.u32 7, %v348_v43 }
  0x1f   : > { %6715 = vmatprep.subr.msk.mxu0 %vm3695_vm0, %v7035_v19  ;;  %vm3727_vm1 = vcmp.eq.s32.totalorder %v1011_v44, %v7078_v2  ;;  %vm3679_vm2 = vcmp.eq.s32.totalorder %v675_v45, %v7078_v2  ;;  %vm3711_vm3 = vcmp.eq.s32.totalorder %v899_v46, %v7078_v2  ;;  %v892_v51 = vand.u32 7, %v380_v47 }
  0x20   : > { %6750 = vmatprep.subr.msk.mxu1 %vm3727_vm1, %v7035_v19  ;;  %6716 = vmatpush3.msk.msra.mxu0 %vm3679_vm2, %v7035_v19  ;;  %vm3694_vm4 = vcmp.eq.s32.totalorder %v780_v48, %v7078_v2  ;;  %vm3726_vm5 = vcmp.eq.s32.totalorder %v1004_v49, %v7078_v2  ;;  %vm3678_vm6 = vcmp.eq.s32.totalorder %v668_v50, %v7078_v2  ;;  %v363_v52 = vadd.s32 200, %v7076_v1 }
  0x21   : > { %6751 = vmatpush3.msk.msra.mxu1 %vm3711_vm3, %v7035_v19  ;;  %6717 = vmatprep.subr.msk.mxu0 %vm3694_vm4, %v7035_v19  ;;  %vm3710_vm7 = vcmp.eq.s32.totalorder %v892_v51, %v7078_v2  ;;  %v395_v53 = vadd.s32 456, %v7076_v1  ;;  %v347_v54 = vadd.s32 72, %v7076_v1  ;;  %v379_v55 = vadd.s32 328, %v7076_v1 }
  0x22   : > { %6752 = vmatprep.subr.msk.mxu1 %vm3726_vm5, %v7035_v19  ;;  %6718 = vmatpush3.msk.msra.mxu0 %vm3678_vm6, %v7035_v19  ;;  %v773_v56 = vand.u32 7, %v363_v52  ;;  %v362_v57 = vadd.s32 192, %v7076_v1  ;;  %v394_v58 = vadd.s32 448, %v7076_v1  ;;  %v346_v59 = vadd.s32 64, %v7076_v1 }
  0x23   : > { %6753 = vmatpush3.msk.msra.mxu1 %vm3710_vm7, %v7035_v19  ;;  %v997_v60 = vand.u32 7, %v395_v53  ;;  %v661_v61 = vand.u32 7, %v347_v54  ;;  %v885_v62 = vand.u32 7, %v379_v55  ;;  %v378_v63 = vadd.s32 320, %v7076_v1 }
  0x24   : > { %vm3693_vm8 = vcmp.eq.s32.totalorder %v773_v56, %v7078_v2  ;;  %v766_v0 = vand.u32 7, %v362_v57  ;;  %v990_v3 = vand.u32 7, %v394_v58  ;;  %v654_v4 = vand.u32 7, %v346_v59  ;;  %v226_v56 = vld [vmem:[%s7250_s24 + $0x8] sm:$0xff] }
  0x25   : > { %6719 = vmatprep.subr.msk.mxu0 %vm3693_vm8, %v7035_v19  ;;  %vm3725_vm9 = vcmp.eq.s32.totalorder %v997_v60, %v7078_v2  ;;  %vm3677_vm10 = vcmp.eq.s32.totalorder %v661_v61, %v7078_v2  ;;  %vm3709_vm11 = vcmp.eq.s32.totalorder %v885_v62, %v7078_v2  ;;  %v878_v5 = vand.u32 7, %v378_v63 }
  0x26   : > { %6754 = vmatprep.subr.msk.mxu1 %vm3725_vm9, %v7035_v19  ;;  %6720 = vmatpush3.msk.msra.mxu0 %vm3677_vm10, %v7035_v19  ;;  %vm3692_vm12 = vcmp.eq.s32.totalorder %v766_v0, %v7078_v2  ;;  %vm3724_vm13 = vcmp.eq.s32.totalorder %v990_v3, %v7078_v2  ;;  %vm3676_vm14 = vcmp.eq.s32.totalorder %v654_v4, %v7078_v2  ;;  %v361_v6 = vadd.s32 184, %v7076_v1 }
  0x27   : > { %6755 = vmatpush3.msk.msra.mxu1 %vm3709_vm11, %v7035_v19  ;;  %6721 = vmatprep.subr.msk.mxu0 %vm3692_vm12, %v7035_v19  ;;  %vm3708_vm15 = vcmp.eq.s32.totalorder %v878_v5, %v7078_v2  ;;  %v393_v7 = vadd.s32 440, %v7076_v1  ;;  %v345_v8 = vadd.s32 56, %v7076_v1  ;;  %v377_v9 = vadd.s32 312, %v7076_v1 }
  0x28   : > { %6756 = vmatprep.subr.msk.mxu1 %vm3724_vm13, %v7035_v19  ;;  %6722 = vmatpush3.msk.msra.mxu0 %vm3676_vm14, %v7035_v19  ;;  %v759_v10 = vand.u32 7, %v361_v6  ;;  %v360_v11 = vadd.s32 176, %v7076_v1  ;;  %v392_v12 = vadd.s32 432, %v7076_v1  ;;  %v344_v13 = vadd.s32 48, %v7076_v1  ;;  %v228_v6 = vld [vmem:[%s7250_s24 + $0x18] sm:$0xff] }
  0x29   : > { %6757 = vmatpush3.msk.msra.mxu1 %vm3708_vm15, %v7035_v19  ;;  %v983_v14 = vand.u32 7, %v393_v7  ;;  %v647_v15 = vand.u32 7, %v345_v8  ;;  %v871_v16 = vand.u32 7, %v377_v9  ;;  %v376_v17 = vadd.s32 304, %v7076_v1 }
  0x2a   : > { %vm3691_vm0 = vcmp.eq.s32.totalorder %v759_v10, %v7078_v2  ;;  %v752_v18 = vand.u32 7, %v360_v11  ;;  %v976_v20 = vand.u32 7, %v392_v12  ;;  %v640_v21 = vand.u32 7, %v344_v13  ;;  %v225_v10 = vld [vmem:[%s7250_s24] sm:$0xff]  ;;  %v227_v11 = vld [vmem:[%s7250_s24 + $0x10] sm:$0xff] }
  0x2b   : > { %6723 = vmatprep.subr.msk.mxu0 %vm3691_vm0, %v7035_v19  ;;  %vm3723_vm1 = vcmp.eq.s32.totalorder %v983_v14, %v7078_v2  ;;  %vm3675_vm2 = vcmp.eq.s32.totalorder %v647_v15, %v7078_v2  ;;  %vm3707_vm3 = vcmp.eq.s32.totalorder %v871_v16, %v7078_v2  ;;  %v864_v22 = vand.u32 7, %v376_v17 }
  0x2c   : > { %6758 = vmatprep.subr.msk.mxu1 %vm3723_vm1, %v7035_v19  ;;  %6724 = vmatpush3.msk.msra.mxu0 %vm3675_vm2, %v7035_v19  ;;  %vm3690_vm4 = vcmp.eq.s32.totalorder %v752_v18, %v7078_v2  ;;  %vm3722_vm5 = vcmp.eq.s32.totalorder %v976_v20, %v7078_v2  ;;  %vm3674_vm6 = vcmp.eq.s32.totalorder %v640_v21, %v7078_v2  ;;  %v359_v23 = vadd.s32 168, %v7076_v1 }
  0x2d   : > { %6759 = vmatpush3.msk.msra.mxu1 %vm3707_vm3, %v7035_v19  ;;  %6725 = vmatprep.subr.msk.mxu0 %vm3690_vm4, %v7035_v19  ;;  %vm3706_vm7 = vcmp.eq.s32.totalorder %v864_v22, %v7078_v2  ;;  %v391_v24 = vadd.s32 424, %v7076_v1  ;;  %v343_v25 = vadd.s32 40, %v7076_v1  ;;  %v375_v26 = vadd.s32 296, %v7076_v1 }
  0x2e   : > { %6760 = vmatprep.subr.msk.mxu1 %vm3722_vm5, %v7035_v19  ;;  %6726 = vmatpush3.msk.msra.mxu0 %vm3674_vm6, %v7035_v19  ;;  %v745_v27 = vand.u32 7, %v359_v23  ;;  %v358_v28 = vadd.s32 160, %v7076_v1  ;;  %v390_v29 = vadd.s32 416, %v7076_v1  ;;  %v342_v30 = vadd.s32 32, %v7076_v1 }
  0x2f   : > { %6761 = vmatpush3.msk.msra.mxu1 %vm3706_vm7, %v7035_v19  ;;  %v969_v31 = vand.u32 7, %v391_v24  ;;  %v633_v32 = vand.u32 7, %v343_v25  ;;  %v857_v33 = vand.u32 7, %v375_v26  ;;  %v374_v34 = vadd.s32 288, %v7076_v1 }
  0x30   : > { %vm3689_vm8 = vcmp.eq.s32.totalorder %v745_v27, %v7078_v2  ;;  %v738_v35 = vand.u32 7, %v358_v28  ;;  %v962_v36 = vand.u32 7, %v390_v29  ;;  %v626_v37 = vand.u32 7, %v342_v30 }
  0x31   : > { %6727 = vmatprep.subr.msk.mxu0 %vm3689_vm8, %v7035_v19  ;;  %vm3721_vm9 = vcmp.eq.s32.totalorder %v969_v31, %v7078_v2  ;;  %vm3673_vm10 = vcmp.eq.s32.totalorder %v633_v32, %v7078_v2  ;;  %vm3705_vm11 = vcmp.eq.s32.totalorder %v857_v33, %v7078_v2  ;;  %v850_v38 = vand.u32 7, %v374_v34 }
  0x32   : > { %6762 = vmatprep.subr.msk.mxu1 %vm3721_vm9, %v7035_v19  ;;  %6728 = vmatpush3.msk.msra.mxu0 %vm3673_vm10, %v7035_v19  ;;  %vm3688_vm12 = vcmp.eq.s32.totalorder %v738_v35, %v7078_v2  ;;  %vm3720_vm13 = vcmp.eq.s32.totalorder %v962_v36, %v7078_v2  ;;  %vm3672_vm14 = vcmp.eq.s32.totalorder %v626_v37, %v7078_v2  ;;  %v357_v39 = vadd.s32 152, %v7076_v1 }
  0x33   : > { %6763 = vmatpush3.msk.msra.mxu1 %vm3705_vm11, %v7035_v19  ;;  %6729 = vmatprep.subr.msk.mxu0 %vm3688_vm12, %v7035_v19  ;;  %vm3704_vm15 = vcmp.eq.s32.totalorder %v850_v38, %v7078_v2  ;;  %v389_v40 = vadd.s32 408, %v7076_v1  ;;  %v341_v41 = vadd.s32 24, %v7076_v1  ;;  %v373_v42 = vadd.s32 280, %v7076_v1 }
  0x34   : > { %6764 = vmatprep.subr.msk.mxu1 %vm3720_vm13, %v7035_v19  ;;  %6730 = vmatpush3.msk.msra.mxu0 %vm3672_vm14, %v7035_v19  ;;  %v731_v43 = vand.u32 7, %v357_v39  ;;  %v356_v44 = vadd.s32 144, %v7076_v1  ;;  %v388_v45 = vadd.s32 400, %v7076_v1  ;;  %v340_v46 = vadd.s32 16, %v7076_v1 }
  0x35   : > { %6765 = vmatpush3.msk.msra.mxu1 %vm3704_vm15, %v7035_v19  ;;  %v955_v47 = vand.u32 7, %v389_v40  ;;  %v619_v48 = vand.u32 7, %v341_v41  ;;  %v843_v49 = vand.u32 7, %v373_v42  ;;  %v372_v50 = vadd.s32 272, %v7076_v1 }
  0x36   : > { %vm3687_vm0 = vcmp.eq.s32.totalorder %v731_v43, %v7078_v2  ;;  %v724_v51 = vand.u32 7, %v356_v44  ;;  %v948_v52 = vand.u32 7, %v388_v45  ;;  %v612_v53 = vand.u32 7, %v340_v46 }
  0x37   : > { %6731 = vmatprep.subr.msk.mxu0 %vm3687_vm0, %v7035_v19  ;;  %vm3719_vm1 = vcmp.eq.s32.totalorder %v955_v47, %v7078_v2  ;;  %vm3671_vm2 = vcmp.eq.s32.totalorder %v619_v48, %v7078_v2  ;;  %vm3703_vm3 = vcmp.eq.s32.totalorder %v843_v49, %v7078_v2  ;;  %v836_v54 = vand.u32 7, %v372_v50 }
  0x38   : > { %6766 = vmatprep.subr.msk.mxu1 %vm3719_vm1, %v7035_v19  ;;  %6732 = vmatpush3.msk.msra.mxu0 %vm3671_vm2, %v7035_v19  ;;  %vm3686_vm4 = vcmp.eq.s32.totalorder %v724_v51, %v7078_v2  ;;  %vm3718_vm5 = vcmp.eq.s32.totalorder %v948_v52, %v7078_v2  ;;  %vm3670_vm6 = vcmp.eq.s32.totalorder %v612_v53, %v7078_v2  ;;  %v355_v55 = vadd.s32 136, %v7076_v1 }
  0x39   : > { %6767 = vmatpush3.msk.msra.mxu1 %vm3703_vm3, %v7035_v19  ;;  %6733 = vmatprep.subr.msk.mxu0 %vm3686_vm4, %v7035_v19  ;;  %vm3702_vm7 = vcmp.eq.s32.totalorder %v836_v54, %v7078_v2  ;;  %v387_v57 = vadd.s32 392, %v7076_v1  ;;  %v339_v58 = vadd.s32 8, %v7076_v1  ;;  %v371_v59 = vadd.s32 264, %v7076_v1 }
  0x3a   : > { %6768 = vmatprep.subr.msk.mxu1 %vm3718_vm5, %v7035_v19  ;;  %6734 = vmatpush3.msk.msra.mxu0 %vm3670_vm6, %v7035_v19  ;;  %v717_v60 = vand.u32 7, %v355_v55  ;;  %v354_v61 = vadd.s32 128, %v7076_v1  ;;  %v386_v62 = vadd.s32 384, %v7076_v1  ;;  %v598_v63 = vand.u32 7, %v7076_v1 }
  0x3b   : > { %6769 = vmatpush3.msk.msra.mxu1 %vm3702_vm7, %v7035_v19  ;;  %v941_v0 = vand.u32 7, %v387_v57  ;;  %v605_v3 = vand.u32 7, %v339_v58  ;;  %v829_v4 = vand.u32 7, %v371_v59  ;;  %v247_v5 = vrot.slane %v226_v56, 4 }
  0x3c   : > { %vm3685_vm8 = vcmp.eq.s32.totalorder %v717_v60, %v7078_v2  ;;  %v710_v7 = vand.u32 7, %v354_v61  ;;  %v934_v8 = vand.u32 7, %v386_v62  ;;  %vm7279_vm9 = vcmp.eq.s32.totalorder %v598_v63, %v7078_v2 }
  0x3d   : > { %6735 = vmatprep.subr.msk.mxu0 %vm3685_vm8, %v7035_v19  ;;  %vm3717_vm10 = vcmp.eq.s32.totalorder %v941_v0, %v7078_v2  ;;  %vm3669_vm11 = vcmp.eq.s32.totalorder %v605_v3, %v7078_v2  ;;  %vm3701_vm12 = vcmp.eq.s32.totalorder %v829_v4, %v7078_v2  ;;  %v248_v12 = vadd.f32 %v247_v5, %v226_v56 }
  0x3e   : > { %6770 = vmatprep.subr.msk.mxu1 %vm3717_vm10, %v7035_v19  ;;  %6736 = vmatpush3.msk.msra.mxu0 %vm3669_vm11, %v7035_v19  ;;  %vm3684_vm13 = vcmp.eq.s32.totalorder %v710_v7, %v7078_v2  ;;  %vm3716_vm14 = vcmp.eq.s32.totalorder %v934_v8, %v7078_v2  ;;  %v370_v13 = vadd.s32 256, %v7076_v1  ;;  %v259_v14 = vrot.slane %v228_v6, 4 }
  0x3f   : > { %6771 = vmatpush3.msk.msra.mxu1 %vm3701_vm12, %v7035_v19  ;;  %6737 = vmatprep.subr.msk.mxu0 %vm3684_vm13, %v7035_v19  ;;  %v249_v15 = vrot.slane %v248_v12, 2  ;;  %v241_v16 = vrot.slane %v225_v10, 4  ;;  %v253_v17 = vrot.slane %v227_v11, 4  ;;  %v433_v18 = vadd.s32 760, %v7076_v1 }
  0x40   : > { %6772 = vmatprep.subr.msk.mxu1 %vm3716_vm14, %v7035_v19  ;;  %6738 = vmatpush3.msk.msra.mxu0 %vm7279_vm9, %v7035_v19  ;;  %v822_v20 = vand.u32 7, %v370_v13  ;;  %v260_v21 = vadd.f32 %v259_v14, %v228_v6  ;;  %v465_v22 = vadd.s32 1016, %v7076_v1  ;;  %v417_v23 = vadd.s32 632, %v7076_v1 }
  0x41   : > { %v250_v24 = vadd.f32 %v249_v15, %v248_v12  ;;  %v242_v25 = vadd.f32 %v241_v16, %v225_v10  ;;  %v254_v26 = vadd.f32 %v253_v17, %v227_v11  ;;  %v1263_v27 = vand.u32 7, %v433_v18 }
  0x42   : > { %vm3700_vm15 = vcmp.eq.s32.totalorder %v822_v20, %v7078_v2  ;;  %v261_v28 = vrot.slane %v260_v21, 2  ;;  %v1487_v29 = vand.u32 7, %v465_v22  ;;  %v1151_v30 = vand.u32 7, %v417_v23 }
  0x43   : > { %v251_v31 = vrot.slane %v250_v24, 1  ;;  %6773 = vmatpush3.msk.msra.mxu1 %vm3700_vm15, %v7035_v19  ;;  %v243_v32 = vrot.slane %v242_v25, 2  ;;  %v255_v33 = vrot.slane %v254_v26, 2  ;;  %vm3763_vm0 = vcmp.eq.s32.totalorder %v1263_v27, %v7078_v2 }
  0x44   : > { %v262_v34 = vadd.f32 %v261_v28, %v260_v21  ;;  %6777 = vmatprep.subr.msk.mxu0 %vm3763_vm0, %v7035_v19  ;;  %vm3795_vm1 = vcmp.eq.s32.totalorder %v1487_v29, %v7078_v2  ;;  %vm7309_vm2 = vcmp.eq.s32.totalorder %v1151_v30, %v7078_v2  ;;  %v449_v36 = vadd.s32 888, %v7076_v1 }
  0x45   : > { %v252_v37 = vadd.f32 %v251_v31, %v250_v24  ;;  %v244_v38 = vadd.f32 %v243_v32, %v242_v25  ;;  %v256_v39 = vadd.f32 %v255_v33, %v254_v26  ;;  %6812 = vmatprep.subr.msk.mxu1 %vm3795_vm1, %v7035_v19  ;;  %v432_v40 = vadd.s32 752, %v7076_v1 }
  0x46   : > { %v263_v41 = vrot.slane %v262_v34, 1  ;;  %v1375_v42 = vand.u32 7, %v449_v36  ;;  %v464_v43 = vadd.s32 1008, %v7076_v1  ;;  %v416_v44 = vadd.s32 624, %v7076_v1 }
  0x47   : > { %4500 = vmatprep.mubr.f32.mxu0 %v252_v37  ;;  %v245_v45 = vrot.slane %v244_v38, 1  ;;  %v257_v46 = vrot.slane %v256_v39, 1  ;;  %v1256_v47 = vand.u32 7, %v432_v40  ;;  %v448_v48 = vadd.s32 880, %v7076_v1 }
  0x48   : > { %v264_v49 = vadd.f32 %v263_v41, %v262_v34  ;;  %vm7320_vm3 = vcmp.eq.s32.totalorder %v1375_v42, %v7078_v2  ;;  %v1480_v51 = vand.u32 7, %v464_v43  ;;  %v1144_v52 = vand.u32 7, %v416_v44 }
  0x49   : > { %v246_v53 = vadd.f32 %v245_v45, %v244_v38  ;;  %v258_v54 = vadd.f32 %v257_v46, %v256_v39  ;;  %vm7325_vm4 = vcmp.eq.s32.totalorder %v1256_v47, %v7078_v2  ;;  %v1368_v56 = vand.u32 7, %v448_v48 }
  0x4a   : > { %4570 = vmatprep.mubr.f32.mxu1 %v264_v49  ;;  %vm7330_vm5 = vcmp.eq.s32.totalorder %v1480_v51, %v7078_v2  ;;  %vm7335_vm6 = vcmp.eq.s32.totalorder %v1144_v52, %v7078_v2  ;;  %v431_v59 = vadd.s32 744, %v7076_v1  ;;  %v463_v60 = vadd.s32 1000, %v7076_v1 }
  0x4b   : > { %4501 = vmatmul.mubr.f32.vlgmr.msra.gmra.mxu0 %v246_v53  ;;  %4571 = vmatmul.mubr.f32.vlgmr.msra.gmra.mxu1 %v258_v54  ;;  %vm7342_vm7 = vcmp.eq.s32.totalorder %v1368_v56, %v7078_v2  ;;  %v415_v62 = vadd.s32 616, %v7076_v1  ;;  %v447_v63 = vadd.s32 872, %v7076_v1  ;;  %v430_v0 = vadd.s32 736, %v7076_v1 }
  0x4c   : > { %6778 = vmatpush3.msk.msra.mxu0 %vm7309_vm2, %v7035_v19  ;;  %6813 = vmatpush3.msk.msra.mxu1 %vm7320_vm3, %v7035_v19  ;;  %v1249_v3 = vand.u32 7, %v431_v59  ;;  %v1473_v4 = vand.u32 7, %v463_v60  ;;  %v462_v5 = vadd.s32 992, %v7076_v1  ;;  %v414_v6 = vadd.s32 608, %v7076_v1 }
  0x4d   : > { %6779 = vmatprep.subr.msk.mxu0 %vm7325_vm4, %v7035_v19  ;;  %6814 = vmatprep.subr.msk.mxu1 %vm7330_vm5, %v7035_v19  ;;  %v1137_v7 = vand.u32 7, %v415_v62  ;;  %v1361_v8 = vand.u32 7, %v447_v63  ;;  %v1242_v9 = vand.u32 7, %v430_v0  ;;  %v446_v10 = vadd.s32 864, %v7076_v1 }
  0x4e   : > { %6780 = vmatpush3.msk.msra.mxu0 %vm7335_vm6, %v7035_v19  ;;  %6815 = vmatpush3.msk.msra.mxu1 %vm7342_vm7, %v7035_v19  ;;  %vm3761_vm8 = vcmp.eq.s32.totalorder %v1249_v3, %v7078_v2  ;;  %vm3793_vm9 = vcmp.eq.s32.totalorder %v1473_v4, %v7078_v2  ;;  %v1466_v11 = vand.u32 7, %v462_v5  ;;  %v1130_v12 = vand.u32 7, %v414_v6 }
  0x4f   : > { %6781 = vmatprep.subr.msk.mxu0 %vm3761_vm8, %v7035_v19  ;;  %6816 = vmatprep.subr.msk.mxu1 %vm3793_vm9, %v7035_v19  ;;  %vm3745_vm10 = vcmp.eq.s32.totalorder %v1137_v7, %v7078_v2  ;;  %vm3777_vm11 = vcmp.eq.s32.totalorder %v1361_v8, %v7078_v2  ;;  %vm3760_vm12 = vcmp.eq.s32.totalorder %v1242_v9, %v7078_v2  ;;  %v1354_v13 = vand.u32 7, %v446_v10 }
  0x50   : > { %6782 = vmatpush3.msk.msra.mxu0 %vm3745_vm10, %v7035_v19  ;;  %6817 = vmatpush3.msk.msra.mxu1 %vm3777_vm11, %v7035_v19  ;;  %vm3792_vm13 = vcmp.eq.s32.totalorder %v1466_v11, %v7078_v2  ;;  %vm3744_vm14 = vcmp.eq.s32.totalorder %v1130_v12, %v7078_v2  ;;  %v429_v14 = vadd.s32 728, %v7076_v1  ;;  %v461_v15 = vadd.s32 984, %v7076_v1 }
  0x51   : > { %6783 = vmatprep.subr.msk.mxu0 %vm3760_vm12, %v7035_v19  ;;  %6818 = vmatprep.subr.msk.mxu1 %vm3792_vm13, %v7035_v19  ;;  %vm3776_vm15 = vcmp.eq.s32.totalorder %v1354_v13, %v7078_v2  ;;  %v413_v16 = vadd.s32 600, %v7076_v1  ;;  %v445_v17 = vadd.s32 856, %v7076_v1  ;;  %v428_v18 = vadd.s32 720, %v7076_v1 }
  0x52   : > { %6784 = vmatpush3.msk.msra.mxu0 %vm3744_vm14, %v7035_v19  ;;  %6819 = vmatpush3.msk.msra.mxu1 %vm3776_vm15, %v7035_v19  ;;  %v1235_v20 = vand.u32 7, %v429_v14  ;;  %v1459_v21 = vand.u32 7, %v461_v15  ;;  %v460_v22 = vadd.s32 976, %v7076_v1  ;;  %v412_v23 = vadd.s32 592, %v7076_v1 }
  0x53   : > { %v1123_v24 = vand.u32 7, %v413_v16  ;;  %v1347_v25 = vand.u32 7, %v445_v17  ;;  %v1228_v26 = vand.u32 7, %v428_v18  ;;  %v444_v27 = vadd.s32 848, %v7076_v1 }
  0x54   : > { %vm3759_vm0 = vcmp.eq.s32.totalorder %v1235_v20, %v7078_v2  ;;  %vm3791_vm1 = vcmp.eq.s32.totalorder %v1459_v21, %v7078_v2  ;;  %v1452_v28 = vand.u32 7, %v460_v22  ;;  %v1116_v29 = vand.u32 7, %v412_v23 }
  0x55   : > { %6785 = vmatprep.subr.msk.mxu0 %vm3759_vm0, %v7035_v19  ;;  %6820 = vmatprep.subr.msk.mxu1 %vm3791_vm1, %v7035_v19  ;;  %vm3743_vm2 = vcmp.eq.s32.totalorder %v1123_v24, %v7078_v2  ;;  %vm3775_vm3 = vcmp.eq.s32.totalorder %v1347_v25, %v7078_v2  ;;  %vm3758_vm4 = vcmp.eq.s32.totalorder %v1228_v26, %v7078_v2  ;;  %v1340_v30 = vand.u32 7, %v444_v27 }
  0x56   : > { %6786 = vmatpush3.msk.msra.mxu0 %vm3743_vm2, %v7035_v19  ;;  %6821 = vmatpush3.msk.msra.mxu1 %vm3775_vm3, %v7035_v19  ;;  %vm3790_vm5 = vcmp.eq.s32.totalorder %v1452_v28, %v7078_v2  ;;  %vm3742_vm6 = vcmp.eq.s32.totalorder %v1116_v29, %v7078_v2  ;;  %v427_v31 = vadd.s32 712, %v7076_v1  ;;  %v459_v32 = vadd.s32 968, %v7076_v1 }
  0x57   : > { %6787 = vmatprep.subr.msk.mxu0 %vm3758_vm4, %v7035_v19  ;;  %6822 = vmatprep.subr.msk.mxu1 %vm3790_vm5, %v7035_v19  ;;  %vm3774_vm7 = vcmp.eq.s32.totalorder %v1340_v30, %v7078_v2  ;;  %v411_v33 = vadd.s32 584, %v7076_v1  ;;  %v443_v34 = vadd.s32 840, %v7076_v1  ;;  %v426_v35 = vadd.s32 704, %v7076_v1 }
  0x58   : > { %6788 = vmatpush3.msk.msra.mxu0 %vm3742_vm6, %v7035_v19  ;;  %6823 = vmatpush3.msk.msra.mxu1 %vm3774_vm7, %v7035_v19  ;;  %v1221_v36 = vand.u32 7, %v427_v31  ;;  %v1445_v37 = vand.u32 7, %v459_v32  ;;  %v458_v38 = vadd.s32 960, %v7076_v1  ;;  %v410_v39 = vadd.s32 576, %v7076_v1 }
  0x59   : > { %v1109_v40 = vand.u32 7, %v411_v33  ;;  %v1333_v41 = vand.u32 7, %v443_v34  ;;  %v1214_v42 = vand.u32 7, %v426_v35  ;;  %v442_v43 = vadd.s32 832, %v7076_v1 }
  0x5a   : > { %vm3757_vm8 = vcmp.eq.s32.totalorder %v1221_v36, %v7078_v2  ;;  %vm3789_vm9 = vcmp.eq.s32.totalorder %v1445_v37, %v7078_v2  ;;  %v1438_v44 = vand.u32 7, %v458_v38  ;;  %v1102_v45 = vand.u32 7, %v410_v39  ;;  %v230_v36 = vld [vmem:[%s7250_s24 + $0x28] sm:$0xff] }
  0x5b   : > { %6789 = vmatprep.subr.msk.mxu0 %vm3757_vm8, %v7035_v19  ;;  %6824 = vmatprep.subr.msk.mxu1 %vm3789_vm9, %v7035_v19  ;;  %vm3741_vm10 = vcmp.eq.s32.totalorder %v1109_v40, %v7078_v2  ;;  %vm3773_vm11 = vcmp.eq.s32.totalorder %v1333_v41, %v7078_v2  ;;  %vm3756_vm12 = vcmp.eq.s32.totalorder %v1214_v42, %v7078_v2  ;;  %v1326_v46 = vand.u32 7, %v442_v43 }
  0x5c   : > { %6790 = vmatpush3.msk.msra.mxu0 %vm3741_vm10, %v7035_v19  ;;  %6825 = vmatpush3.msk.msra.mxu1 %vm3773_vm11, %v7035_v19  ;;  %vm3788_vm13 = vcmp.eq.s32.totalorder %v1438_v44, %v7078_v2  ;;  %vm3740_vm14 = vcmp.eq.s32.totalorder %v1102_v45, %v7078_v2  ;;  %v425_v47 = vadd.s32 696, %v7076_v1  ;;  %v457_v48 = vadd.s32 952, %v7076_v1 }
  0x5d   : > { %6791 = vmatprep.subr.msk.mxu0 %vm3756_vm12, %v7035_v19  ;;  %6826 = vmatprep.subr.msk.mxu1 %vm3788_vm13, %v7035_v19  ;;  %vm3772_vm15 = vcmp.eq.s32.totalorder %v1326_v46, %v7078_v2  ;;  %v409_v49 = vadd.s32 568, %v7076_v1  ;;  %v441_v50 = vadd.s32 824, %v7076_v1  ;;  %v424_v51 = vadd.s32 688, %v7076_v1 }
  0x5e   : > { %6792 = vmatpush3.msk.msra.mxu0 %vm3740_vm14, %v7035_v19  ;;  %6827 = vmatpush3.msk.msra.mxu1 %vm3772_vm15, %v7035_v19  ;;  %v1207_v52 = vand.u32 7, %v425_v47  ;;  %v1431_v53 = vand.u32 7, %v457_v48  ;;  %v456_v54 = vadd.s32 944, %v7076_v1  ;;  %v408_v55 = vadd.s32 560, %v7076_v1  ;;  %v229_v48 = vld [vmem:[%s7250_s24 + $0x20] sm:$0xff] }
  0x5f   : > { %v1095_v56 = vand.u32 7, %v409_v49  ;;  %v1319_v57 = vand.u32 7, %v441_v50  ;;  %v1200_v58 = vand.u32 7, %v424_v51  ;;  %v440_v59 = vadd.s32 816, %v7076_v1  ;;  %v232_v51 = vld [vmem:[%s7250_s24 + $0x38] sm:$0xff] }
  0x60   : > { %vm3755_vm0 = vcmp.eq.s32.totalorder %v1207_v52, %v7078_v2  ;;  %vm3787_vm1 = vcmp.eq.s32.totalorder %v1431_v53, %v7078_v2  ;;  %v1424_v60 = vand.u32 7, %v456_v54  ;;  %v1088_v61 = vand.u32 7, %v408_v55  ;;  %v231_v53 = vld [vmem:[%s7250_s24 + $0x30] sm:$0xff] }
  0x61   : > { %6793 = vmatprep.subr.msk.mxu0 %vm3755_vm0, %v7035_v19  ;;  %6828 = vmatprep.subr.msk.mxu1 %vm3787_vm1, %v7035_v19  ;;  %vm3739_vm2 = vcmp.eq.s32.totalorder %v1095_v56, %v7078_v2  ;;  %vm3771_vm3 = vcmp.eq.s32.totalorder %v1319_v57, %v7078_v2  ;;  %vm3754_vm4 = vcmp.eq.s32.totalorder %v1200_v58, %v7078_v2  ;;  %v1312_v62 = vand.u32 7, %v440_v59 }
  0x62   : > { %6794 = vmatpush3.msk.msra.mxu0 %vm3739_vm2, %v7035_v19  ;;  %6829 = vmatpush3.msk.msra.mxu1 %vm3771_vm3, %v7035_v19  ;;  %vm3786_vm5 = vcmp.eq.s32.totalorder %v1424_v60, %v7078_v2  ;;  %vm3738_vm6 = vcmp.eq.s32.totalorder %v1088_v61, %v7078_v2  ;;  %v423_v63 = vadd.s32 680, %v7076_v1  ;;  %v455_v0 = vadd.s32 936, %v7076_v1 }
  0x63   : > { %6795 = vmatprep.subr.msk.mxu0 %vm3754_vm4, %v7035_v19  ;;  %6830 = vmatprep.subr.msk.mxu1 %vm3786_vm5, %v7035_v19  ;;  %vm3770_vm7 = vcmp.eq.s32.totalorder %v1312_v62, %v7078_v2  ;;  %v407_v3 = vadd.s32 552, %v7076_v1  ;;  %v439_v4 = vadd.s32 808, %v7076_v1  ;;  %v422_v5 = vadd.s32 672, %v7076_v1 }
  0x64   : > { %6796 = vmatpush3.msk.msra.mxu0 %vm3738_vm6, %v7035_v19  ;;  %6831 = vmatpush3.msk.msra.mxu1 %vm3770_vm7, %v7035_v19  ;;  %v1193_v6 = vand.u32 7, %v423_v63  ;;  %v1417_v7 = vand.u32 7, %v455_v0  ;;  %v454_v8 = vadd.s32 928, %v7076_v1  ;;  %v406_v9 = vadd.s32 544, %v7076_v1 }
  0x65   : > { %v1081_v10 = vand.u32 7, %v407_v3  ;;  %v1305_v11 = vand.u32 7, %v439_v4  ;;  %v1186_v12 = vand.u32 7, %v422_v5  ;;  %v438_v13 = vadd.s32 800, %v7076_v1 }
  0x66   : > { %vm3753_vm8 = vcmp.eq.s32.totalorder %v1193_v6, %v7078_v2  ;;  %vm3785_vm9 = vcmp.eq.s32.totalorder %v1417_v7, %v7078_v2  ;;  %v1410_v14 = vand.u32 7, %v454_v8  ;;  %v1074_v15 = vand.u32 7, %v406_v9 }
  0x67   : > { %6797 = vmatprep.subr.msk.mxu0 %vm3753_vm8, %v7035_v19  ;;  %6832 = vmatprep.subr.msk.mxu1 %vm3785_vm9, %v7035_v19  ;;  %vm3737_vm10 = vcmp.eq.s32.totalorder %v1081_v10, %v7078_v2  ;;  %vm3769_vm11 = vcmp.eq.s32.totalorder %v1305_v11, %v7078_v2  ;;  %vm3752_vm12 = vcmp.eq.s32.totalorder %v1186_v12, %v7078_v2  ;;  %v1298_v16 = vand.u32 7, %v438_v13 }
  0x68   : > { %6798 = vmatpush3.msk.msra.mxu0 %vm3737_vm10, %v7035_v19  ;;  %6833 = vmatpush3.msk.msra.mxu1 %vm3769_vm11, %v7035_v19  ;;  %vm3784_vm13 = vcmp.eq.s32.totalorder %v1410_v14, %v7078_v2  ;;  %vm3736_vm14 = vcmp.eq.s32.totalorder %v1074_v15, %v7078_v2  ;;  %v421_v17 = vadd.s32 664, %v7076_v1  ;;  %v453_v18 = vadd.s32 920, %v7076_v1 }
  0x69   : > { %6799 = vmatprep.subr.msk.mxu0 %vm3752_vm12, %v7035_v19  ;;  %6834 = vmatprep.subr.msk.mxu1 %vm3784_vm13, %v7035_v19  ;;  %vm3768_vm15 = vcmp.eq.s32.totalorder %v1298_v16, %v7078_v2  ;;  %v405_v20 = vadd.s32 536, %v7076_v1  ;;  %v437_v21 = vadd.s32 792, %v7076_v1  ;;  %v420_v22 = vadd.s32 656, %v7076_v1 }
  0x6a   : > { %6800 = vmatpush3.msk.msra.mxu0 %vm3736_vm14, %v7035_v19  ;;  %6835 = vmatpush3.msk.msra.mxu1 %vm3768_vm15, %v7035_v19  ;;  %v1179_v23 = vand.u32 7, %v421_v17  ;;  %v1403_v24 = vand.u32 7, %v453_v18  ;;  %v452_v25 = vadd.s32 912, %v7076_v1  ;;  %v404_v26 = vadd.s32 528, %v7076_v1 }
  0x6b   : > { %v1067_v27 = vand.u32 7, %v405_v20  ;;  %v1291_v28 = vand.u32 7, %v437_v21  ;;  %v1172_v29 = vand.u32 7, %v420_v22  ;;  %v436_v30 = vadd.s32 784, %v7076_v1 }
  0x6c   : > { %vm3751_vm0 = vcmp.eq.s32.totalorder %v1179_v23, %v7078_v2  ;;  %vm3783_vm1 = vcmp.eq.s32.totalorder %v1403_v24, %v7078_v2  ;;  %v1396_v31 = vand.u32 7, %v452_v25  ;;  %v1060_v32 = vand.u32 7, %v404_v26 }
  0x6d   : > { %6801 = vmatprep.subr.msk.mxu0 %vm3751_vm0, %v7035_v19  ;;  %6836 = vmatprep.subr.msk.mxu1 %vm3783_vm1, %v7035_v19  ;;  %vm3735_vm2 = vcmp.eq.s32.totalorder %v1067_v27, %v7078_v2  ;;  %vm3767_vm3 = vcmp.eq.s32.totalorder %v1291_v28, %v7078_v2  ;;  %vm3750_vm4 = vcmp.eq.s32.totalorder %v1172_v29, %v7078_v2  ;;  %v1284_v33 = vand.u32 7, %v436_v30 }
  0x6e   : > { %6802 = vmatpush3.msk.msra.mxu0 %vm3735_vm2, %v7035_v19  ;;  %6837 = vmatpush3.msk.msra.mxu1 %vm3767_vm3, %v7035_v19  ;;  %vm3782_vm5 = vcmp.eq.s32.totalorder %v1396_v31, %v7078_v2  ;;  %vm3734_vm6 = vcmp.eq.s32.totalorder %v1060_v32, %v7078_v2  ;;  %v419_v34 = vadd.s32 648, %v7076_v1  ;;  %v451_v35 = vadd.s32 904, %v7076_v1 }
  0x6f   : > { %6803 = vmatprep.subr.msk.mxu0 %vm3750_vm4, %v7035_v19  ;;  %6838 = vmatprep.subr.msk.mxu1 %vm3782_vm5, %v7035_v19  ;;  %vm3766_vm7 = vcmp.eq.s32.totalorder %v1284_v33, %v7078_v2  ;;  %v403_v37 = vadd.s32 520, %v7076_v1  ;;  %v435_v38 = vadd.s32 776, %v7076_v1  ;;  %v418_v39 = vadd.s32 640, %v7076_v1 }
  0x70   : > { %6804 = vmatpush3.msk.msra.mxu0 %vm3734_vm6, %v7035_v19  ;;  %6839 = vmatpush3.msk.msra.mxu1 %vm3766_vm7, %v7035_v19  ;;  %v1165_v40 = vand.u32 7, %v419_v34  ;;  %v1389_v41 = vand.u32 7, %v451_v35  ;;  %v450_v42 = vadd.s32 896, %v7076_v1  ;;  %v402_v43 = vadd.s32 512, %v7076_v1 }
  0x71   : > { %v1053_v44 = vand.u32 7, %v403_v37  ;;  %v1277_v45 = vand.u32 7, %v435_v38  ;;  %v1158_v46 = vand.u32 7, %v418_v39  ;;  %v271_v47 = vrot.slane %v230_v36, 4 }
  0x72   : > { %vm3749_vm8 = vcmp.eq.s32.totalorder %v1165_v40, %v7078_v2  ;;  %vm3781_vm9 = vcmp.eq.s32.totalorder %v1389_v41, %v7078_v2  ;;  %v1382_v49 = vand.u32 7, %v450_v42  ;;  %v1046_v50 = vand.u32 7, %v402_v43 }
  0x73   : > { %6805 = vmatprep.subr.msk.mxu0 %vm3749_vm8, %v7035_v19  ;;  %6840 = vmatprep.subr.msk.mxu1 %vm3781_vm9, %v7035_v19  ;;  %vm3733_vm10 = vcmp.eq.s32.totalorder %v1053_v44, %v7078_v2  ;;  %vm3765_vm11 = vcmp.eq.s32.totalorder %v1277_v45, %v7078_v2  ;;  %vm3748_vm12 = vcmp.eq.s32.totalorder %v1158_v46, %v7078_v2  ;;  %v434_v52 = vadd.s32 768, %v7076_v1 }
  0x74   : > { %6806 = vmatpush3.msk.msra.mxu0 %vm3733_vm10, %v7035_v19  ;;  %6841 = vmatpush3.msk.msra.mxu1 %vm3765_vm11, %v7035_v19  ;;  %vm3780_vm13 = vcmp.eq.s32.totalorder %v1382_v49, %v7078_v2  ;;  %vm3732_vm14 = vcmp.eq.s32.totalorder %v1046_v50, %v7078_v2  ;;  %v272_v54 = vadd.f32 %v271_v47, %v230_v36  ;;  %v265_v55 = vrot.slane %v229_v48, 4 }
  0x75   : > { %6807 = vmatprep.subr.msk.mxu0 %vm3748_vm12, %v7035_v19  ;;  %6842 = vmatprep.subr.msk.mxu1 %vm3780_vm13, %v7035_v19  ;;  %v1270_v56 = vand.u32 7, %v434_v52  ;;  %v283_v57 = vrot.slane %v232_v51, 4  ;;  %v497_v58 = vadd.s32 1272, %v7076_v1  ;;  %v529_v59 = vadd.s32 1528, %v7076_v1 }
  0x76   : > { %6808 = vmatpush3.msk.msra.mxu0 %vm3732_vm14, %v7035_v19  ;;  %v273_v60 = vrot.slane %v272_v54, 2  ;;  %v266_v61 = vadd.f32 %v265_v55, %v229_v48  ;;  %v277_v62 = vrot.slane %v231_v53, 4  ;;  %v481_v63 = vadd.s32 1144, %v7076_v1 }
  0x77   : > { %vm3764_vm15 = vcmp.eq.s32.totalorder %v1270_v56, %v7078_v2  ;;  %v284_v0 = vadd.f32 %v283_v57, %v232_v51  ;;  %v1711_v3 = vand.u32 7, %v497_v58  ;;  %v1935_v4 = vand.u32 7, %v529_v59 }
  0x78   : > { %v274_v5 = vadd.f32 %v273_v60, %v272_v54  ;;  %6843 = vmatpush3.msk.msra.mxu1 %vm3764_vm15, %v7035_v19  ;;  %v267_v6 = vrot.slane %v266_v61, 2  ;;  %v278_v7 = vadd.f32 %v277_v62, %v231_v53  ;;  %v1599_v8 = vand.u32 7, %v481_v63 }
  0x79   : > { %v285_v9 = vrot.slane %v284_v0, 2  ;;  %vm3827_vm0 = vcmp.eq.s32.totalorder %v1711_v3, %v7078_v2  ;;  %vm3859_vm1 = vcmp.eq.s32.totalorder %v1935_v4, %v7078_v2  ;;  %v513_v10 = vadd.s32 1400, %v7076_v1 }
  0x7a   : > { %v275_v11 = vrot.slane %v274_v5, 1  ;;  %v268_v12 = vadd.f32 %v267_v6, %v266_v61  ;;  %6847 = vmatprep.subr.msk.mxu0 %vm3827_vm0, %v7035_v19  ;;  %6882 = vmatprep.subr.msk.mxu1 %vm3859_vm1, %v7035_v19  ;;  %v279_v13 = vrot.slane %v278_v7, 2  ;;  %vm7543_vm2 = vcmp.eq.s32.totalorder %v1599_v8, %v7078_v2 }
  0x7b   : > { %v286_v15 = vadd.f32 %v285_v9, %v284_v0  ;;  %v1823_v16 = vand.u32 7, %v513_v10  ;;  %v496_v17 = vadd.s32 1264, %v7076_v1  ;;  %v528_v18 = vadd.s32 1520, %v7076_v1 }
  0x7c   : > { %v276_v20 = vadd.f32 %v275_v11, %v274_v5  ;;  %v269_v21 = vrot.slane %v268_v12, 1  ;;  %v280_v22 = vadd.f32 %v279_v13, %v278_v7  ;;  %v480_v23 = vadd.s32 1136, %v7076_v1 }
  0x7d   : > { %v287_v24 = vrot.slane %v286_v15, 1  ;;  %vm7551_vm3 = vcmp.eq.s32.totalorder %v1823_v16, %v7078_v2  ;;  %v1704_v26 = vand.u32 7, %v496_v17  ;;  %v1928_v27 = vand.u32 7, %v528_v18 }
  0x7e   : > { %4640 = vmatprep.mubr.f32.mxu0 %v276_v20  ;;  %v270_v28 = vadd.f32 %v269_v21, %v268_v12  ;;  %v281_v29 = vrot.slane %v280_v22, 1  ;;  %v1592_v30 = vand.u32 7, %v480_v23  ;;  %v512_v31 = vadd.s32 1392, %v7076_v1 }
  0x7f   : > { %v288_v32 = vadd.f32 %v287_v24, %v286_v15  ;;  %vm3826_vm4 = vcmp.eq.s32.totalorder %v1704_v26, %v7078_v2  ;;  %vm7558_vm5 = vcmp.eq.s32.totalorder %v1928_v27, %v7078_v2  ;;  %v495_v34 = vadd.s32 1256, %v7076_v1 }
  0x80   : > { %4641 = vmatmul.mubr.f32.vlgmr.msra.gmra.mxu0 %v270_v28  ;;  %v282_v35 = vadd.f32 %v281_v29, %v280_v22  ;;  %vm7564_vm6 = vcmp.eq.s32.totalorder %v1592_v30, %v7078_v2  ;;  %v1816_v37 = vand.u32 7, %v512_v31  ;;  %v527_v38 = vadd.s32 1512, %v7076_v1 }
  0x81   : > { %4710 = vmatprep.mubr.f32.mxu1 %v288_v32  ;;  %6848 = vmatpush3.msk.msra.mxu0 %vm7543_vm2, %v7035_v19  ;;  %v1697_v39 = vand.u32 7, %v495_v34  ;;  %v479_v40 = vadd.s32 1128, %v7076_v1  ;;  %v511_v41 = vadd.s32 1384, %v7076_v1  ;;  %v494_v42 = vadd.s32 1248, %v7076_v1 }
  0x82   : > { %4711 = vmatmul.mubr.f32.vlgmr.msra.gmra.mxu1 %v282_v35  ;;  %6849 = vmatprep.subr.msk.mxu0 %vm3826_vm4, %v7035_v19  ;;  %vm7577_vm7 = vcmp.eq.s32.totalorder %v1816_v37, %v7078_v2  ;;  %v1921_v44 = vand.u32 7, %v527_v38  ;;  %v526_v45 = vadd.s32 1504, %v7076_v1  ;;  %v478_v46 = vadd.s32 1120, %v7076_v1 }
  0x83   : > { %6883 = vmatpush3.msk.msra.mxu1 %vm7551_vm3, %v7035_v19  ;;  %6850 = vmatpush3.msk.msra.mxu0 %vm7564_vm6, %v7035_v19  ;;  %vm3825_vm8 = vcmp.eq.s32.totalorder %v1697_v39, %v7078_v2  ;;  %v1585_v47 = vand.u32 7, %v479_v40  ;;  %v1809_v48 = vand.u32 7, %v511_v41  ;;  %v1690_v49 = vand.u32 7, %v494_v42 }
  0x84   : > { %6884 = vmatprep.subr.msk.mxu1 %vm7558_vm5, %v7035_v19  ;;  %6851 = vmatprep.subr.msk.mxu0 %vm3825_vm8, %v7035_v19  ;;  %vm3857_vm9 = vcmp.eq.s32.totalorder %v1921_v44, %v7078_v2  ;;  %v1914_v50 = vand.u32 7, %v526_v45  ;;  %v1578_v51 = vand.u32 7, %v478_v46  ;;  %v510_v52 = vadd.s32 1376, %v7076_v1 }
  0x85   : > { %6885 = vmatpush3.msk.msra.mxu1 %vm7577_vm7, %v7035_v19  ;;  %vm3809_vm10 = vcmp.eq.s32.totalorder %v1585_v47, %v7078_v2  ;;  %vm3841_vm11 = vcmp.eq.s32.totalorder %v1809_v48, %v7078_v2  ;;  %vm3824_vm12 = vcmp.eq.s32.totalorder %v1690_v49, %v7078_v2  ;;  %v493_v53 = vadd.s32 1240, %v7076_v1 }
  0x86   : > { %6886 = vmatprep.subr.msk.mxu1 %vm3857_vm9, %v7035_v19  ;;  %6852 = vmatpush3.msk.msra.mxu0 %vm3809_vm10, %v7035_v19  ;;  %vm3856_vm13 = vcmp.eq.s32.totalorder %v1914_v50, %v7078_v2  ;;  %vm3808_vm14 = vcmp.eq.s32.totalorder %v1578_v51, %v7078_v2  ;;  %v1802_v54 = vand.u32 7, %v510_v52  ;;  %v525_v55 = vadd.s32 1496, %v7076_v1 }
  0x87   : > { %6887 = vmatpush3.msk.msra.mxu1 %vm3841_vm11, %v7035_v19  ;;  %6853 = vmatprep.subr.msk.mxu0 %vm3824_vm12, %v7035_v19  ;;  %v1683_v56 = vand.u32 7, %v493_v53  ;;  %v477_v57 = vadd.s32 1112, %v7076_v1  ;;  %v509_v58 = vadd.s32 1368, %v7076_v1  ;;  %v492_v59 = vadd.s32 1232, %v7076_v1 }
  0x88   : > { %6888 = vmatprep.subr.msk.mxu1 %vm3856_vm13, %v7035_v19  ;;  %6854 = vmatpush3.msk.msra.mxu0 %vm3808_vm14, %v7035_v19  ;;  %vm3840_vm15 = vcmp.eq.s32.totalorder %v1802_v54, %v7078_v2  ;;  %v1907_v60 = vand.u32 7, %v525_v55  ;;  %v524_v61 = vadd.s32 1488, %v7076_v1  ;;  %v476_v62 = vadd.s32 1104, %v7076_v1 }
  0x89   : > { %6889 = vmatpush3.msk.msra.mxu1 %vm3840_vm15, %v7035_v19  ;;  %vm3823_vm0 = vcmp.eq.s32.totalorder %v1683_v56, %v7078_v2  ;;  %v1571_v63 = vand.u32 7, %v477_v57  ;;  %v1795_v0 = vand.u32 7, %v509_v58  ;;  %v1676_v3 = vand.u32 7, %v492_v59 }
  0x8a   : > { %6855 = vmatprep.subr.msk.mxu0 %vm3823_vm0, %v7035_v19  ;;  %vm3855_vm1 = vcmp.eq.s32.totalorder %v1907_v60, %v7078_v2  ;;  %v1900_v4 = vand.u32 7, %v524_v61  ;;  %v1564_v5 = vand.u32 7, %v476_v62  ;;  %v508_v6 = vadd.s32 1360, %v7076_v1 }
  0x8b   : > { %6890 = vmatprep.subr.msk.mxu1 %vm3855_vm1, %v7035_v19  ;;  %vm3807_vm2 = vcmp.eq.s32.totalorder %v1571_v63, %v7078_v2  ;;  %vm3839_vm3 = vcmp.eq.s32.totalorder %v1795_v0, %v7078_v2  ;;  %vm3822_vm4 = vcmp.eq.s32.totalorder %v1676_v3, %v7078_v2  ;;  %v491_v7 = vadd.s32 1224, %v7076_v1 }
  0x8c   : > { %6856 = vmatpush3.msk.msra.mxu0 %vm3807_vm2, %v7035_v19  ;;  %6891 = vmatpush3.msk.msra.mxu1 %vm3839_vm3, %v7035_v19  ;;  %vm3854_vm5 = vcmp.eq.s32.totalorder %v1900_v4, %v7078_v2  ;;  %vm3806_vm6 = vcmp.eq.s32.totalorder %v1564_v5, %v7078_v2  ;;  %v1788_v8 = vand.u32 7, %v508_v6  ;;  %v523_v9 = vadd.s32 1480, %v7076_v1 }
  0x8d   : > { %6857 = vmatprep.subr.msk.mxu0 %vm3822_vm4, %v7035_v19  ;;  %6892 = vmatprep.subr.msk.mxu1 %vm3854_vm5, %v7035_v19  ;;  %v1669_v10 = vand.u32 7, %v491_v7  ;;  %v475_v11 = vadd.s32 1096, %v7076_v1  ;;  %v507_v12 = vadd.s32 1352, %v7076_v1  ;;  %v490_v13 = vadd.s32 1216, %v7076_v1 }
  0x8e   : > { %6858 = vmatpush3.msk.msra.mxu0 %vm3806_vm6, %v7035_v19  ;;  %vm3838_vm7 = vcmp.eq.s32.totalorder %v1788_v8, %v7078_v2  ;;  %v1893_v14 = vand.u32 7, %v523_v9  ;;  %v522_v15 = vadd.s32 1472, %v7076_v1  ;;  %v474_v16 = vadd.s32 1088, %v7076_v1 }
  0x8f   : > { %6893 = vmatpush3.msk.msra.mxu1 %vm3838_vm7, %v7035_v19  ;;  %vm3821_vm8 = vcmp.eq.s32.totalorder %v1669_v10, %v7078_v2  ;;  %v1557_v17 = vand.u32 7, %v475_v11  ;;  %v1781_v18 = vand.u32 7, %v507_v12  ;;  %v1662_v20 = vand.u32 7, %v490_v13 }
  0x90   : > { %6859 = vmatprep.subr.msk.mxu0 %vm3821_vm8, %v7035_v19  ;;  %vm3853_vm9 = vcmp.eq.s32.totalorder %v1893_v14, %v7078_v2  ;;  %v1886_v21 = vand.u32 7, %v522_v15  ;;  %v1550_v22 = vand.u32 7, %v474_v16  ;;  %v506_v23 = vadd.s32 1344, %v7076_v1 }
  0x91   : > { %6894 = vmatprep.subr.msk.mxu1 %vm3853_vm9, %v7035_v19  ;;  %vm3805_vm10 = vcmp.eq.s32.totalorder %v1557_v17, %v7078_v2  ;;  %vm3837_vm11 = vcmp.eq.s32.totalorder %v1781_v18, %v7078_v2  ;;  %vm3820_vm12 = vcmp.eq.s32.totalorder %v1662_v20, %v7078_v2  ;;  %v489_v24 = vadd.s32 1208, %v7076_v1  ;;  %v234_v17 = vld [vmem:[%s7250_s24 + $0x48] sm:$0xff] }
  0x92   : > { %6860 = vmatpush3.msk.msra.mxu0 %vm3805_vm10, %v7035_v19  ;;  %6895 = vmatpush3.msk.msra.mxu1 %vm3837_vm11, %v7035_v19  ;;  %vm3852_vm13 = vcmp.eq.s32.totalorder %v1886_v21, %v7078_v2  ;;  %vm3804_vm14 = vcmp.eq.s32.totalorder %v1550_v22, %v7078_v2  ;;  %v1774_v25 = vand.u32 7, %v506_v23  ;;  %v521_v26 = vadd.s32 1464, %v7076_v1 }
  0x93   : > { %6861 = vmatprep.subr.msk.mxu0 %vm3820_vm12, %v7035_v19  ;;  %6896 = vmatprep.subr.msk.mxu1 %vm3852_vm13, %v7035_v19  ;;  %v1655_v27 = vand.u32 7, %v489_v24  ;;  %v473_v28 = vadd.s32 1080, %v7076_v1  ;;  %v505_v29 = vadd.s32 1336, %v7076_v1  ;;  %v488_v30 = vadd.s32 1200, %v7076_v1 }
  0x94   : > { %6862 = vmatpush3.msk.msra.mxu0 %vm3804_vm14, %v7035_v19  ;;  %vm3836_vm15 = vcmp.eq.s32.totalorder %v1774_v25, %v7078_v2  ;;  %v1879_v31 = vand.u32 7, %v521_v26  ;;  %v520_v32 = vadd.s32 1456, %v7076_v1  ;;  %v472_v33 = vadd.s32 1072, %v7076_v1  ;;  %v233_v25 = vld [vmem:[%s7250_s24 + $0x40] sm:$0xff] }
  0x95   : > { %6897 = vmatpush3.msk.msra.mxu1 %vm3836_vm15, %v7035_v19  ;;  %vm3819_vm0 = vcmp.eq.s32.totalorder %v1655_v27, %v7078_v2  ;;  %v1543_v34 = vand.u32 7, %v473_v28  ;;  %v1767_v35 = vand.u32 7, %v505_v29  ;;  %v1648_v36 = vand.u32 7, %v488_v30  ;;  %v236_v29 = vld [vmem:[%s7250_s24 + $0x58] sm:$0xff] }
  0x96   : > { %6863 = vmatprep.subr.msk.mxu0 %vm3819_vm0, %v7035_v19  ;;  %vm3851_vm1 = vcmp.eq.s32.totalorder %v1879_v31, %v7078_v2  ;;  %v1872_v37 = vand.u32 7, %v520_v32  ;;  %v1536_v38 = vand.u32 7, %v472_v33  ;;  %v504_v39 = vadd.s32 1328, %v7076_v1  ;;  %v7751_v31 = vld [vmem:[%s7250_s24 + $0x50] sm:$0xff] }
  0x97   : > { %6898 = vmatprep.subr.msk.mxu1 %vm3851_vm1, %v7035_v19  ;;  %vm3803_vm2 = vcmp.eq.s32.totalorder %v1543_v34, %v7078_v2  ;;  %vm3835_vm3 = vcmp.eq.s32.totalorder %v1767_v35, %v7078_v2  ;;  %vm3818_vm4 = vcmp.eq.s32.totalorder %v1648_v36, %v7078_v2  ;;  %v487_v40 = vadd.s32 1192, %v7076_v1 }
  0x98   : > { %6864 = vmatpush3.msk.msra.mxu0 %vm3803_vm2, %v7035_v19  ;;  %6899 = vmatpush3.msk.msra.mxu1 %vm3835_vm3, %v7035_v19  ;;  %vm3850_vm5 = vcmp.eq.s32.totalorder %v1872_v37, %v7078_v2  ;;  %vm3802_vm6 = vcmp.eq.s32.totalorder %v1536_v38, %v7078_v2  ;;  %v1760_v41 = vand.u32 7, %v504_v39  ;;  %v519_v42 = vadd.s32 1448, %v7076_v1 }
  0x99   : > { %6865 = vmatprep.subr.msk.mxu0 %vm3818_vm4, %v7035_v19  ;;  %6900 = vmatprep.subr.msk.mxu1 %vm3850_vm5, %v7035_v19  ;;  %v1641_v43 = vand.u32 7, %v487_v40  ;;  %v471_v44 = vadd.s32 1064, %v7076_v1  ;;  %v503_v45 = vadd.s32 1320, %v7076_v1  ;;  %v486_v46 = vadd.s32 1184, %v7076_v1 }
  0x9a   : > { %6866 = vmatpush3.msk.msra.mxu0 %vm3802_vm6, %v7035_v19  ;;  %vm3834_vm7 = vcmp.eq.s32.totalorder %v1760_v41, %v7078_v2  ;;  %v1865_v47 = vand.u32 7, %v519_v42  ;;  %v518_v48 = vadd.s32 1440, %v7076_v1  ;;  %v470_v49 = vadd.s32 1056, %v7076_v1 }
  0x9b   : > { %6901 = vmatpush3.msk.msra.mxu1 %vm3834_vm7, %v7035_v19  ;;  %vm3817_vm8 = vcmp.eq.s32.totalorder %v1641_v43, %v7078_v2  ;;  %v1529_v50 = vand.u32 7, %v471_v44  ;;  %v1753_v51 = vand.u32 7, %v503_v45  ;;  %v1634_v52 = vand.u32 7, %v486_v46 }
  0x9c   : > { %6867 = vmatprep.subr.msk.mxu0 %vm3817_vm8, %v7035_v19  ;;  %vm3849_vm9 = vcmp.eq.s32.totalorder %v1865_v47, %v7078_v2  ;;  %v1858_v53 = vand.u32 7, %v518_v48  ;;  %v1522_v54 = vand.u32 7, %v470_v49  ;;  %v502_v55 = vadd.s32 1312, %v7076_v1 }
  0x9d   : > { %6902 = vmatprep.subr.msk.mxu1 %vm3849_vm9, %v7035_v19  ;;  %vm3801_vm10 = vcmp.eq.s32.totalorder %v1529_v50, %v7078_v2  ;;  %vm3833_vm11 = vcmp.eq.s32.totalorder %v1753_v51, %v7078_v2  ;;  %vm3816_vm12 = vcmp.eq.s32.totalorder %v1634_v52, %v7078_v2  ;;  %v485_v56 = vadd.s32 1176, %v7076_v1 }
  0x9e   : > { %6868 = vmatpush3.msk.msra.mxu0 %vm3801_vm10, %v7035_v19  ;;  %6903 = vmatpush3.msk.msra.mxu1 %vm3833_vm11, %v7035_v19  ;;  %vm3848_vm13 = vcmp.eq.s32.totalorder %v1858_v53, %v7078_v2  ;;  %vm3800_vm14 = vcmp.eq.s32.totalorder %v1522_v54, %v7078_v2  ;;  %v1746_v57 = vand.u32 7, %v502_v55  ;;  %v517_v58 = vadd.s32 1432, %v7076_v1 }
  0x9f   : > { %6869 = vmatprep.subr.msk.mxu0 %vm3816_vm12, %v7035_v19  ;;  %6904 = vmatprep.subr.msk.mxu1 %vm3848_vm13, %v7035_v19  ;;  %v1627_v59 = vand.u32 7, %v485_v56  ;;  %v469_v60 = vadd.s32 1048, %v7076_v1  ;;  %v501_v61 = vadd.s32 1304, %v7076_v1  ;;  %v484_v62 = vadd.s32 1168, %v7076_v1 }
  0xa0   : > { %6870 = vmatpush3.msk.msra.mxu0 %vm3800_vm14, %v7035_v19  ;;  %vm3832_vm15 = vcmp.eq.s32.totalorder %v1746_v57, %v7078_v2  ;;  %v1851_v63 = vand.u32 7, %v517_v58  ;;  %v516_v0 = vadd.s32 1424, %v7076_v1  ;;  %v468_v3 = vadd.s32 1040, %v7076_v1 }
  0xa1   : > { %6905 = vmatpush3.msk.msra.mxu1 %vm3832_vm15, %v7035_v19  ;;  %vm3815_vm0 = vcmp.eq.s32.totalorder %v1627_v59, %v7078_v2  ;;  %v1515_v4 = vand.u32 7, %v469_v60  ;;  %v1739_v5 = vand.u32 7, %v501_v61  ;;  %v1620_v6 = vand.u32 7, %v484_v62 }
  0xa2   : > { %6871 = vmatprep.subr.msk.mxu0 %vm3815_vm0, %v7035_v19  ;;  %vm3847_vm1 = vcmp.eq.s32.totalorder %v1851_v63, %v7078_v2  ;;  %v1844_v7 = vand.u32 7, %v516_v0  ;;  %v1508_v8 = vand.u32 7, %v468_v3  ;;  %v500_v9 = vadd.s32 1296, %v7076_v1 }
  0xa3   : > { %6906 = vmatprep.subr.msk.mxu1 %vm3847_vm1, %v7035_v19  ;;  %vm3799_vm2 = vcmp.eq.s32.totalorder %v1515_v4, %v7078_v2  ;;  %vm3831_vm3 = vcmp.eq.s32.totalorder %v1739_v5, %v7078_v2  ;;  %vm3814_vm4 = vcmp.eq.s32.totalorder %v1620_v6, %v7078_v2  ;;  %v483_v10 = vadd.s32 1160, %v7076_v1 }
  0xa4   : > { %6872 = vmatpush3.msk.msra.mxu0 %vm3799_vm2, %v7035_v19  ;;  %6907 = vmatpush3.msk.msra.mxu1 %vm3831_vm3, %v7035_v19  ;;  %vm3846_vm5 = vcmp.eq.s32.totalorder %v1844_v7, %v7078_v2  ;;  %vm3798_vm6 = vcmp.eq.s32.totalorder %v1508_v8, %v7078_v2  ;;  %v1732_v11 = vand.u32 7, %v500_v9  ;;  %v515_v12 = vadd.s32 1416, %v7076_v1 }
  0xa5   : > { %6873 = vmatprep.subr.msk.mxu0 %vm3814_vm4, %v7035_v19  ;;  %6908 = vmatprep.subr.msk.mxu1 %vm3846_vm5, %v7035_v19  ;;  %v1613_v13 = vand.u32 7, %v483_v10  ;;  %v467_v14 = vadd.s32 1032, %v7076_v1  ;;  %v499_v15 = vadd.s32 1288, %v7076_v1  ;;  %v482_v16 = vadd.s32 1152, %v7076_v1 }
  0xa6   : > { %6874 = vmatpush3.msk.msra.mxu0 %vm3798_vm6, %v7035_v19  ;;  %vm3830_vm7 = vcmp.eq.s32.totalorder %v1732_v11, %v7078_v2  ;;  %v1837_v18 = vand.u32 7, %v515_v12  ;;  %v514_v20 = vadd.s32 1408, %v7076_v1  ;;  %v466_v21 = vadd.s32 1024, %v7076_v1 }
  0xa7   : > { %6909 = vmatpush3.msk.msra.mxu1 %vm3830_vm7, %v7035_v19  ;;  %vm3813_vm8 = vcmp.eq.s32.totalorder %v1613_v13, %v7078_v2  ;;  %v1501_v22 = vand.u32 7, %v467_v14  ;;  %v1725_v23 = vand.u32 7, %v499_v15  ;;  %v1606_v24 = vand.u32 7, %v482_v16 }
  0xa8   : > { %6875 = vmatprep.subr.msk.mxu0 %vm3813_vm8, %v7035_v19  ;;  %vm3845_vm9 = vcmp.eq.s32.totalorder %v1837_v18, %v7078_v2  ;;  %v1830_v26 = vand.u32 7, %v514_v20  ;;  %v1494_v27 = vand.u32 7, %v466_v21  ;;  %v295_v28 = vrot.slane %v234_v17, 4 }
  0xa9   : > { %6910 = vmatprep.subr.msk.mxu1 %vm3845_vm9, %v7035_v19  ;;  %vm3797_vm10 = vcmp.eq.s32.totalorder %v1501_v22, %v7078_v2  ;;  %vm3829_vm11 = vcmp.eq.s32.totalorder %v1725_v23, %v7078_v2  ;;  %vm3812_vm12 = vcmp.eq.s32.totalorder %v1606_v24, %v7078_v2  ;;  %v498_v30 = vadd.s32 1280, %v7076_v1 }
  0xaa   : > { %6876 = vmatpush3.msk.msra.mxu0 %vm3797_vm10, %v7035_v19  ;;  %6911 = vmatpush3.msk.msra.mxu1 %vm3829_vm11, %v7035_v19  ;;  %vm3844_vm13 = vcmp.eq.s32.totalorder %v1830_v26, %v7078_v2  ;;  %vm3796_vm14 = vcmp.eq.s32.totalorder %v1494_v27, %v7078_v2  ;;  %v296_v32 = vadd.f32 %v295_v28, %v234_v17  ;;  %v289_v33 = vrot.slane %v233_v25, 4 }
  0xab   : > { %6877 = vmatprep.subr.msk.mxu0 %vm3812_vm12, %v7035_v19  ;;  %6912 = vmatprep.subr.msk.mxu1 %vm3844_vm13, %v7035_v19  ;;  %v1718_v34 = vand.u32 7, %v498_v30  ;;  %v307_v35 = vrot.slane %v236_v29, 4  ;;  %v561_v36 = vadd.s32 1784, %v7076_v1  ;;  %v593_v37 = vadd.s32 2040, %v7076_v1 }
  0xac   : > { %6878 = vmatpush3.msk.msra.mxu0 %vm3796_vm14, %v7035_v19  ;;  %v297_v38 = vrot.slane %v296_v32, 2  ;;  %v290_v39 = vadd.f32 %v289_v33, %v233_v25  ;;  %v301_v40 = vrot.slane %v7751_v31, 4  ;;  %v545_v41 = vadd.s32 1656, %v7076_v1 }
  0xad   : > { %vm3828_vm15 = vcmp.eq.s32.totalorder %v1718_v34, %v7078_v2  ;;  %v308_v42 = vadd.f32 %v307_v35, %v236_v29  ;;  %v2159_v43 = vand.u32 7, %v561_v36  ;;  %v2383_v44 = vand.u32 7, %v593_v37 }
  0xae   : > { %v298_v45 = vadd.f32 %v297_v38, %v296_v32  ;;  %6913 = vmatpush3.msk.msra.mxu1 %vm3828_vm15, %v7035_v19  ;;  %v291_v46 = vrot.slane %v290_v39, 2  ;;  %v302_v47 = vadd.f32 %v301_v40, %v7751_v31  ;;  %v2047_v48 = vand.u32 7, %v545_v41 }
  0xaf   : > { %v309_v49 = vrot.slane %v308_v42, 2  ;;  %vm3891_vm0 = vcmp.eq.s32.totalorder %v2159_v43, %v7078_v2  ;;  %vm3923_vm1 = vcmp.eq.s32.totalorder %v2383_v44, %v7078_v2  ;;  %v577_v50 = vadd.s32 1912, %v7076_v1 }
  0xb0   : > { %v299_v51 = vrot.slane %v298_v45, 1  ;;  %v292_v52 = vadd.f32 %v291_v46, %v290_v39  ;;  %6917 = vmatprep.subr.msk.mxu0 %vm3891_vm0, %v7035_v19  ;;  %6952 = vmatprep.subr.msk.mxu1 %vm3923_vm1, %v7035_v19  ;;  %v303_v53 = vrot.slane %v302_v47, 2  ;;  %vm7773_vm2 = vcmp.eq.s32.totalorder %v2047_v48, %v7078_v2 }
  0xb1   : > { %v310_v55 = vadd.f32 %v309_v49, %v308_v42  ;;  %v2271_v56 = vand.u32 7, %v577_v50  ;;  %v560_v57 = vadd.s32 1776, %v7076_v1  ;;  %v592_v58 = vadd.s32 2032, %v7076_v1 }
  0xb2   : > { %v300_v59 = vadd.f32 %v299_v51, %v298_v45  ;;  %v293_v60 = vrot.slane %v292_v52, 1  ;;  %v304_v61 = vadd.f32 %v303_v53, %v302_v47  ;;  %v544_v62 = vadd.s32 1648, %v7076_v1 }
  0xb3   : > { %v311_v63 = vrot.slane %v310_v55, 1  ;;  %vm7781_vm3 = vcmp.eq.s32.totalorder %v2271_v56, %v7078_v2  ;;  %v2152_v3 = vand.u32 7, %v560_v57  ;;  %v2376_v4 = vand.u32 7, %v592_v58 }
  0xb4   : > { %4780 = vmatprep.mubr.f32.mxu0 %v300_v59  ;;  %v294_v5 = vadd.f32 %v293_v60, %v292_v52  ;;  %v305_v6 = vrot.slane %v304_v61, 1  ;;  %v2040_v7 = vand.u32 7, %v544_v62  ;;  %v576_v8 = vadd.s32 1904, %v7076_v1 }
  0xb5   : > { %v312_v9 = vadd.f32 %v311_v63, %v310_v55  ;;  %vm3890_vm4 = vcmp.eq.s32.totalorder %v2152_v3, %v7078_v2  ;;  %vm7788_vm5 = vcmp.eq.s32.totalorder %v2376_v4, %v7078_v2  ;;  %v559_v11 = vadd.s32 1768, %v7076_v1 }
  0xb6   : > { %4781 = vmatmul.mubr.f32.vlgmr.msra.gmra.mxu0 %v294_v5  ;;  %v306_v12 = vadd.f32 %v305_v6, %v304_v61  ;;  %vm7794_vm6 = vcmp.eq.s32.totalorder %v2040_v7, %v7078_v2  ;;  %v2264_v14 = vand.u32 7, %v576_v8  ;;  %v591_v15 = vadd.s32 2024, %v7076_v1 }
  0xb7   : > { %4850 = vmatprep.mubr.f32.mxu1 %v312_v9  ;;  %6918 = vmatpush3.msk.msra.mxu0 %vm7773_vm2, %v7035_v19  ;;  %v2145_v16 = vand.u32 7, %v559_v11  ;;  %v543_v17 = vadd.s32 1640, %v7076_v1  ;;  %v575_v18 = vadd.s32 1896, %v7076_v1  ;;  %v558_v20 = vadd.s32 1760, %v7076_v1 }
  0xb8   : > { %4851 = vmatmul.mubr.f32.vlgmr.msra.gmra.mxu1 %v306_v12  ;;  %6919 = vmatprep.subr.msk.mxu0 %vm3890_vm4, %v7035_v19  ;;  %vm7807_vm7 = vcmp.eq.s32.totalorder %v2264_v14, %v7078_v2  ;;  %v2369_v22 = vand.u32 7, %v591_v15  ;;  %v590_v23 = vadd.s32 2016, %v7076_v1  ;;  %v542_v24 = vadd.s32 1632, %v7076_v1 }
  0xb9   : > { %6953 = vmatpush3.msk.msra.mxu1 %vm7781_vm3, %v7035_v19  ;;  %6920 = vmatpush3.msk.msra.mxu0 %vm7794_vm6, %v7035_v19  ;;  %vm3889_vm8 = vcmp.eq.s32.totalorder %v2145_v16, %v7078_v2  ;;  %v2033_v25 = vand.u32 7, %v543_v17  ;;  %v2257_v26 = vand.u32 7, %v575_v18  ;;  %v2138_v27 = vand.u32 7, %v558_v20 }
  0xba   : > { %6954 = vmatprep.subr.msk.mxu1 %vm7788_vm5, %v7035_v19  ;;  %6921 = vmatprep.subr.msk.mxu0 %vm3889_vm8, %v7035_v19  ;;  %vm3921_vm9 = vcmp.eq.s32.totalorder %v2369_v22, %v7078_v2  ;;  %v2362_v28 = vand.u32 7, %v590_v23  ;;  %v2026_v29 = vand.u32 7, %v542_v24  ;;  %v574_v30 = vadd.s32 1888, %v7076_v1 }
  0xbb   : > { %6955 = vmatpush3.msk.msra.mxu1 %vm7807_vm7, %v7035_v19  ;;  %vm3873_vm10 = vcmp.eq.s32.totalorder %v2033_v25, %v7078_v2  ;;  %vm3905_vm11 = vcmp.eq.s32.totalorder %v2257_v26, %v7078_v2  ;;  %vm3888_vm12 = vcmp.eq.s32.totalorder %v2138_v27, %v7078_v2  ;;  %v557_v32 = vadd.s32 1752, %v7076_v1 }
  0xbc   : > { %6956 = vmatprep.subr.msk.mxu1 %vm3921_vm9, %v7035_v19  ;;  %6922 = vmatpush3.msk.msra.mxu0 %vm3873_vm10, %v7035_v19  ;;  %vm3920_vm13 = vcmp.eq.s32.totalorder %v2362_v28, %v7078_v2  ;;  %vm3872_vm14 = vcmp.eq.s32.totalorder %v2026_v29, %v7078_v2  ;;  %v2250_v33 = vand.u32 7, %v574_v30  ;;  %v589_v34 = vadd.s32 2008, %v7076_v1 }
  0xbd   : > { %6957 = vmatpush3.msk.msra.mxu1 %vm3905_vm11, %v7035_v19  ;;  %6923 = vmatprep.subr.msk.mxu0 %vm3888_vm12, %v7035_v19  ;;  %v2131_v35 = vand.u32 7, %v557_v32  ;;  %v541_v36 = vadd.s32 1624, %v7076_v1  ;;  %v573_v37 = vadd.s32 1880, %v7076_v1  ;;  %v556_v38 = vadd.s32 1744, %v7076_v1 }
  0xbe   : > { %6958 = vmatprep.subr.msk.mxu1 %vm3920_vm13, %v7035_v19  ;;  %6924 = vmatpush3.msk.msra.mxu0 %vm3872_vm14, %v7035_v19  ;;  %vm3904_vm15 = vcmp.eq.s32.totalorder %v2250_v33, %v7078_v2  ;;  %v2355_v39 = vand.u32 7, %v589_v34  ;;  %v588_v40 = vadd.s32 2000, %v7076_v1  ;;  %v540_v41 = vadd.s32 1616, %v7076_v1 }
  0xbf   : > { %6959 = vmatpush3.msk.msra.mxu1 %vm3904_vm15, %v7035_v19  ;;  %vm3887_vm0 = vcmp.eq.s32.totalorder %v2131_v35, %v7078_v2  ;;  %v2019_v42 = vand.u32 7, %v541_v36  ;;  %v2243_v43 = vand.u32 7, %v573_v37  ;;  %v2124_v44 = vand.u32 7, %v556_v38 }
  0xc0   : > { %6925 = vmatprep.subr.msk.mxu0 %vm3887_vm0, %v7035_v19  ;;  %vm3919_vm1 = vcmp.eq.s32.totalorder %v2355_v39, %v7078_v2  ;;  %v2348_v45 = vand.u32 7, %v588_v40  ;;  %v2012_v46 = vand.u32 7, %v540_v41  ;;  %v572_v47 = vadd.s32 1872, %v7076_v1 }
  0xc1   : > { %6960 = vmatprep.subr.msk.mxu1 %vm3919_vm1, %v7035_v19  ;;  %vm3871_vm2 = vcmp.eq.s32.totalorder %v2019_v42, %v7078_v2  ;;  %vm3903_vm3 = vcmp.eq.s32.totalorder %v2243_v43, %v7078_v2  ;;  %vm3886_vm4 = vcmp.eq.s32.totalorder %v2124_v44, %v7078_v2  ;;  %v555_v48 = vadd.s32 1736, %v7076_v1 }
  0xc2   : > { %6926 = vmatpush3.msk.msra.mxu0 %vm3871_vm2, %v7035_v19  ;;  %6961 = vmatpush3.msk.msra.mxu1 %vm3903_vm3, %v7035_v19  ;;  %vm3918_vm5 = vcmp.eq.s32.totalorder %v2348_v45, %v7078_v2  ;;  %vm3870_vm6 = vcmp.eq.s32.totalorder %v2012_v46, %v7078_v2  ;;  %v2236_v49 = vand.u32 7, %v572_v47  ;;  %v587_v50 = vadd.s32 1992, %v7076_v1 }
  0xc3   : > { %6927 = vmatprep.subr.msk.mxu0 %vm3886_vm4, %v7035_v19  ;;  %6962 = vmatprep.subr.msk.mxu1 %vm3918_vm5, %v7035_v19  ;;  %v2117_v51 = vand.u32 7, %v555_v48  ;;  %v539_v52 = vadd.s32 1608, %v7076_v1  ;;  %v571_v53 = vadd.s32 1864, %v7076_v1  ;;  %v554_v54 = vadd.s32 1728, %v7076_v1 }
  0xc4   : > { %6928 = vmatpush3.msk.msra.mxu0 %vm3870_vm6, %v7035_v19  ;;  %vm3902_vm7 = vcmp.eq.s32.totalorder %v2236_v49, %v7078_v2  ;;  %v2341_v55 = vand.u32 7, %v587_v50  ;;  %v586_v56 = vadd.s32 1984, %v7076_v1  ;;  %v538_v57 = vadd.s32 1600, %v7076_v1 }
  0xc5   : > { %6963 = vmatpush3.msk.msra.mxu1 %vm3902_vm7, %v7035_v19  ;;  %vm3885_vm8 = vcmp.eq.s32.totalorder %v2117_v51, %v7078_v2  ;;  %v2005_v58 = vand.u32 7, %v539_v52  ;;  %v2229_v59 = vand.u32 7, %v571_v53  ;;  %v2110_v60 = vand.u32 7, %v554_v54 }
  0xc6   : > { %6929 = vmatprep.subr.msk.mxu0 %vm3885_vm8, %v7035_v19  ;;  %vm3917_vm9 = vcmp.eq.s32.totalorder %v2341_v55, %v7078_v2  ;;  %v2334_v61 = vand.u32 7, %v586_v56  ;;  %v1998_v62 = vand.u32 7, %v538_v57  ;;  %v570_v63 = vadd.s32 1856, %v7076_v1 }
  0xc7   : > { %6964 = vmatprep.subr.msk.mxu1 %vm3917_vm9, %v7035_v19  ;;  %vm3869_vm10 = vcmp.eq.s32.totalorder %v2005_v58, %v7078_v2  ;;  %vm3901_vm11 = vcmp.eq.s32.totalorder %v2229_v59, %v7078_v2  ;;  %vm3884_vm12 = vcmp.eq.s32.totalorder %v2110_v60, %v7078_v2  ;;  %v553_v0 = vadd.s32 1720, %v7076_v1  ;;  %v7965_v59 = vld [vmem:[%s7250_s24 + $0x68] sm:$0xff] }
  0xc8   : > { %6930 = vmatpush3.msk.msra.mxu0 %vm3869_vm10, %v7035_v19  ;;  %6965 = vmatpush3.msk.msra.mxu1 %vm3901_vm11, %v7035_v19  ;;  %vm3916_vm13 = vcmp.eq.s32.totalorder %v2334_v61, %v7078_v2  ;;  %vm3868_vm14 = vcmp.eq.s32.totalorder %v1998_v62, %v7078_v2  ;;  %v2222_v3 = vand.u32 7, %v570_v63  ;;  %v585_v4 = vadd.s32 1976, %v7076_v1 }
  0xc9   : > { %6931 = vmatprep.subr.msk.mxu0 %vm3884_vm12, %v7035_v19  ;;  %6966 = vmatprep.subr.msk.mxu1 %vm3916_vm13, %v7035_v19  ;;  %v2103_v5 = vand.u32 7, %v553_v0  ;;  %v537_v6 = vadd.s32 1592, %v7076_v1  ;;  %v569_v7 = vadd.s32 1848, %v7076_v1  ;;  %v552_v8 = vadd.s32 1712, %v7076_v1 }
  0xca   : > { %6932 = vmatpush3.msk.msra.mxu0 %vm3868_vm14, %v7035_v19  ;;  %vm3900_vm15 = vcmp.eq.s32.totalorder %v2222_v3, %v7078_v2  ;;  %v2327_v9 = vand.u32 7, %v585_v4  ;;  %v584_v10 = vadd.s32 1968, %v7076_v1  ;;  %v536_v11 = vadd.s32 1584, %v7076_v1  ;;  %v7974_v4 = vld [vmem:[%s7250_s24 + $0x78] sm:$0xff] }
  0xcb   : > { %6967 = vmatpush3.msk.msra.mxu1 %vm3900_vm15, %v7035_v19  ;;  %vm3883_vm0 = vcmp.eq.s32.totalorder %v2103_v5, %v7078_v2  ;;  %v1991_v12 = vand.u32 7, %v537_v6  ;;  %v2215_v13 = vand.u32 7, %v569_v7  ;;  %v2096_v14 = vand.u32 7, %v552_v8  ;;  %v7980_v8 = vld [vmem:[%s7250_s24 + $0x60] sm:$0xff] }
  0xcc   : > { %6933 = vmatprep.subr.msk.mxu0 %vm3883_vm0, %v7035_v19  ;;  %vm3915_vm1 = vcmp.eq.s32.totalorder %v2327_v9, %v7078_v2  ;;  %v2320_v15 = vand.u32 7, %v584_v10  ;;  %v1984_v16 = vand.u32 7, %v536_v11  ;;  %v568_v17 = vadd.s32 1840, %v7076_v1  ;;  %v7983_v9 = vld [vmem:[%s7250_s24 + $0x70] sm:$0xff] }
  0xcd   : > { %6968 = vmatprep.subr.msk.mxu1 %vm3915_vm1, %v7035_v19  ;;  %vm3867_vm2 = vcmp.eq.s32.totalorder %v1991_v12, %v7078_v2  ;;  %vm3899_vm3 = vcmp.eq.s32.totalorder %v2215_v13, %v7078_v2  ;;  %vm3882_vm4 = vcmp.eq.s32.totalorder %v2096_v14, %v7078_v2  ;;  %v551_v18 = vadd.s32 1704, %v7076_v1 }
  0xce   : > { %6934 = vmatpush3.msk.msra.mxu0 %vm3867_vm2, %v7035_v19  ;;  %6969 = vmatpush3.msk.msra.mxu1 %vm3899_vm3, %v7035_v19  ;;  %vm3914_vm5 = vcmp.eq.s32.totalorder %v2320_v15, %v7078_v2  ;;  %vm3866_vm6 = vcmp.eq.s32.totalorder %v1984_v16, %v7078_v2  ;;  %v2208_v20 = vand.u32 7, %v568_v17  ;;  %v583_v21 = vadd.s32 1960, %v7076_v1 }
  0xcf   : > { %6935 = vmatprep.subr.msk.mxu0 %vm3882_vm4, %v7035_v19  ;;  %6970 = vmatprep.subr.msk.mxu1 %vm3914_vm5, %v7035_v19  ;;  %v2089_v22 = vand.u32 7, %v551_v18  ;;  %v535_v23 = vadd.s32 1576, %v7076_v1  ;;  %v567_v24 = vadd.s32 1832, %v7076_v1  ;;  %v550_v25 = vadd.s32 1696, %v7076_v1 }
  0xd0   : > { %6936 = vmatpush3.msk.msra.mxu0 %vm3866_vm6, %v7035_v19  ;;  %vm3898_vm7 = vcmp.eq.s32.totalorder %v2208_v20, %v7078_v2  ;;  %v2313_v26 = vand.u32 7, %v583_v21  ;;  %v582_v27 = vadd.s32 1952, %v7076_v1  ;;  %v534_v28 = vadd.s32 1568, %v7076_v1 }
  0xd1   : > { %6971 = vmatpush3.msk.msra.mxu1 %vm3898_vm7, %v7035_v19  ;;  %vm3881_vm8 = vcmp.eq.s32.totalorder %v2089_v22, %v7078_v2  ;;  %v1977_v29 = vand.u32 7, %v535_v23  ;;  %v2201_v30 = vand.u32 7, %v567_v24  ;;  %v2082_v32 = vand.u32 7, %v550_v25 }
  0xd2   : > { %6937 = vmatprep.subr.msk.mxu0 %vm3881_vm8, %v7035_v19  ;;  %vm3913_vm9 = vcmp.eq.s32.totalorder %v2313_v26, %v7078_v2  ;;  %v2306_v33 = vand.u32 7, %v582_v27  ;;  %v1970_v34 = vand.u32 7, %v534_v28  ;;  %v566_v35 = vadd.s32 1824, %v7076_v1 }
  0xd3   : > { %6972 = vmatprep.subr.msk.mxu1 %vm3913_vm9, %v7035_v19  ;;  %vm3865_vm10 = vcmp.eq.s32.totalorder %v1977_v29, %v7078_v2  ;;  %vm3897_vm11 = vcmp.eq.s32.totalorder %v2201_v30, %v7078_v2  ;;  %vm3880_vm12 = vcmp.eq.s32.totalorder %v2082_v32, %v7078_v2  ;;  %v549_v36 = vadd.s32 1688, %v7076_v1 }
  0xd4   : > { %6938 = vmatpush3.msk.msra.mxu0 %vm3865_vm10, %v7035_v19  ;;  %6973 = vmatpush3.msk.msra.mxu1 %vm3897_vm11, %v7035_v19  ;;  %vm3912_vm13 = vcmp.eq.s32.totalorder %v2306_v33, %v7078_v2  ;;  %vm3864_vm14 = vcmp.eq.s32.totalorder %v1970_v34, %v7078_v2  ;;  %v2194_v37 = vand.u32 7, %v566_v35  ;;  %v581_v38 = vadd.s32 1944, %v7076_v1 }
  0xd5   : > { %6939 = vmatprep.subr.msk.mxu0 %vm3880_vm12, %v7035_v19  ;;  %6974 = vmatprep.subr.msk.mxu1 %vm3912_vm13, %v7035_v19  ;;  %v2075_v39 = vand.u32 7, %v549_v36  ;;  %v533_v40 = vadd.s32 1560, %v7076_v1  ;;  %v565_v41 = vadd.s32 1816, %v7076_v1  ;;  %v548_v42 = vadd.s32 1680, %v7076_v1 }
  0xd6   : > { %6940 = vmatpush3.msk.msra.mxu0 %vm3864_vm14, %v7035_v19  ;;  %vm3896_vm15 = vcmp.eq.s32.totalorder %v2194_v37, %v7078_v2  ;;  %v2299_v43 = vand.u32 7, %v581_v38  ;;  %v580_v44 = vadd.s32 1936, %v7076_v1  ;;  %v532_v45 = vadd.s32 1552, %v7076_v1  ;;  %v4998_v38 = vld [vmem:[%s8149_s1] sm:$0xff] }
  0xd7   : > { %6975 = vmatpush3.msk.msra.mxu1 %vm3896_vm15, %v7035_v19  ;;  %vm3879_vm0 = vcmp.eq.s32.totalorder %v2075_v39, %v7078_v2  ;;  %v1963_v46 = vand.u32 7, %v533_v40  ;;  %v2187_v47 = vand.u32 7, %v565_v41  ;;  %v2068_v48 = vand.u32 7, %v548_v42 }
  0xd8   : > { %6941 = vmatprep.subr.msk.mxu0 %vm3879_vm0, %v7035_v19  ;;  %vm3911_vm1 = vcmp.eq.s32.totalorder %v2299_v43, %v7078_v2  ;;  %v2292_v49 = vand.u32 7, %v580_v44  ;;  %v1956_v50 = vand.u32 7, %v532_v45  ;;  %v564_v51 = vadd.s32 1808, %v7076_v1 }
  0xd9   : > { %6976 = vmatprep.subr.msk.mxu1 %vm3911_vm1, %v7035_v19  ;;  %vm3863_vm2 = vcmp.eq.s32.totalorder %v1963_v46, %v7078_v2  ;;  %vm3895_vm3 = vcmp.eq.s32.totalorder %v2187_v47, %v7078_v2  ;;  %vm3878_vm4 = vcmp.eq.s32.totalorder %v2068_v48, %v7078_v2  ;;  %v547_v52 = vadd.s32 1672, %v7076_v1 }
  0xda   : > { %6942 = vmatpush3.msk.msra.mxu0 %vm3863_vm2, %v7035_v19  ;;  %6977 = vmatpush3.msk.msra.mxu1 %vm3895_vm3, %v7035_v19  ;;  %vm3910_vm5 = vcmp.eq.s32.totalorder %v2292_v49, %v7078_v2  ;;  %vm3862_vm6 = vcmp.eq.s32.totalorder %v1956_v50, %v7078_v2  ;;  %v2180_v53 = vand.u32 7, %v564_v51  ;;  %v579_v54 = vadd.s32 1928, %v7076_v1 }
  0xdb   : > { %6943 = vmatprep.subr.msk.mxu0 %vm3878_vm4, %v7035_v19  ;;  %6978 = vmatprep.subr.msk.mxu1 %vm3910_vm5, %v7035_v19  ;;  %v2061_v55 = vand.u32 7, %v547_v52  ;;  %v531_v56 = vadd.s32 1544, %v7076_v1  ;;  %v563_v57 = vadd.s32 1800, %v7076_v1  ;;  %v546_v58 = vadd.s32 1664, %v7076_v1 }
  0xdc   : > { %6944 = vmatpush3.msk.msra.mxu0 %vm3862_vm6, %v7035_v19  ;;  %vm3894_vm7 = vcmp.eq.s32.totalorder %v2180_v53, %v7078_v2  ;;  %v2285_v60 = vand.u32 7, %v579_v54  ;;  %v578_v61 = vadd.s32 1920, %v7076_v1  ;;  %v530_v62 = vadd.s32 1536, %v7076_v1 }
  0xdd   : > { %6979 = vmatpush3.msk.msra.mxu1 %vm3894_vm7, %v7035_v19  ;;  %vm3877_vm8 = vcmp.eq.s32.totalorder %v2061_v55, %v7078_v2  ;;  %v1949_v63 = vand.u32 7, %v531_v56  ;;  %v2173_v0 = vand.u32 7, %v563_v57  ;;  %v2054_v3 = vand.u32 7, %v546_v58 }
  0xde   : > { %6945 = vmatprep.subr.msk.mxu0 %vm3877_vm8, %v7035_v19  ;;  %vm3909_vm9 = vcmp.eq.s32.totalorder %v2285_v60, %v7078_v2  ;;  %v2278_v5 = vand.u32 7, %v578_v61  ;;  %v1942_v6 = vand.u32 7, %v530_v62  ;;  %v319_v7 = vrot.slane %v7965_v59, 4 }
  0xdf   : > { %6980 = vmatprep.subr.msk.mxu1 %vm3909_vm9, %v7035_v19  ;;  %vm3861_vm10 = vcmp.eq.s32.totalorder %v1949_v63, %v7078_v2  ;;  %vm3893_vm11 = vcmp.eq.s32.totalorder %v2173_v0, %v7078_v2  ;;  %vm3876_vm12 = vcmp.eq.s32.totalorder %v2054_v3, %v7078_v2  ;;  %v562_v10 = vadd.s32 1792, %v7076_v1 }
  0xe0   : > { %6946 = vmatpush3.msk.msra.mxu0 %vm3861_vm10, %v7035_v19  ;;  %6981 = vmatpush3.msk.msra.mxu1 %vm3893_vm11, %v7035_v19  ;;  %vm3908_vm13 = vcmp.eq.s32.totalorder %v2278_v5, %v7078_v2  ;;  %vm3860_vm14 = vcmp.eq.s32.totalorder %v1942_v6, %v7078_v2  ;;  %v320_v11 = vadd.f32 %v319_v7, %v7965_v59  ;;  %v331_v12 = vrot.slane %v7974_v4, 4 }
  0xe1   : > { %6947 = vmatprep.subr.msk.mxu0 %vm3876_vm12, %v7035_v19  ;;  %6982 = vmatprep.subr.msk.mxu1 %vm3908_vm13, %v7035_v19  ;;  %v2166_v13 = vand.u32 7, %v562_v10  ;;  %v313_v14 = vrot.slane %v7980_v8, 4  ;;  %v325_v15 = vrot.slane %v7983_v9, 4  ;;  %v7036_v37 = vmov 0.0  }
  0xe2   : > { %6948 = vmatpush3.msk.msra.mxu0 %vm3860_vm14, %v7035_v19  ;;  %v321_v16 = vrot.slane %v320_v11, 2  ;;  %v332_v17 = vadd.f32 %v331_v12, %v7974_v4  ;;  %vm7037_vm0 = vmmov 0   ;;  %vm5002_vm1 = vcmask 64512  }
  0xe3   : > { %vm3892_vm15 = vcmp.eq.s32.totalorder %v2166_v13, %v7078_v2  ;;  %v314_v18 = vadd.f32 %v313_v14, %v7980_v8  ;;  %v326_v20 = vadd.f32 %v325_v15, %v7983_v9  ;;  %6991 = vmatprep.subr.mxu0 %v7036_v37  ;;  %v5000_v13 = vld [vmem:[%s8151_s3] sm:$0x3]  ;;  %vm5081_vm2 = vcmask 1041408  }
  0xe4   : > { %v322_v21 = vadd.f32 %v321_v16, %v320_v11  ;;  %6983 = vmatpush3.msk.msra.mxu1 %vm3892_vm15, %v7035_v19  ;;  %v333_v22 = vrot.slane %v332_v17, 2  ;;  %v4999_v14 = vld [vmem:[%s8150_s2] sm:$0x1]  ;;  %vm5077_vm3 = vcmask 15360  }
  0xe5   : > { %v315_v23 = vrot.slane %v314_v18, 2  ;;  %v327_v24 = vrot.slane %v326_v20, 2  ;;  %6996 = vmatprep.subr.mxu1 %v7036_v37 }
  0xe6   : > { %v323_v25 = vrot.slane %v322_v21, 1  ;;  %v334_v26 = vadd.f32 %v333_v22, %v332_v17  ;;  %v5180_v22 = vand.u32 7, %v7078_v2 }
  0xe7   : > { %v316_v27 = vadd.f32 %v315_v23, %v314_v18  ;;  %v328_v28 = vadd.f32 %v327_v24, %v326_v20  ;;  %v5161_v20 = vadd.s32 128, %v7078_v2  ;;  %v5162_v23 = vadd.s32 256, %v7078_v2 }
  0xe8   : > { %v324_v29 = vadd.f32 %v323_v25, %v322_v21  ;;  %v335_v30 = vrot.slane %v334_v26, 1  ;;  %v5163_v21 = vadd.s32 384, %v7078_v2  ;;  %v5165_v24 = vadd.s32 640, %v7078_v2 }
  0xe9   : > { %v317_v32 = vrot.slane %v316_v27, 1  ;;  %v329_v33 = vrot.slane %v328_v28, 1  ;;  %v5167_v25 = vadd.s32 896, %v7078_v2  ;;  %vm5368_vm4 = vcmp.eq.s32.totalorder %v7076_v1, %v5180_v22 }
  0xea   : > { %4920 = vmatprep.mubr.f32.mxu0 %v324_v29  ;;  %v336_v34 = vadd.f32 %v335_v30, %v334_v26  ;;  %v5187_v26 = vand.u32 7, %v5161_v20  ;;  %v5215_v29 = vand.u32 7, %v5165_v24 }
  0xeb   : > { %v318_v35 = vadd.f32 %v317_v32, %v316_v27  ;;  %v330_v36 = vadd.f32 %v329_v33, %v328_v28  ;;  %v5201_v27 = vand.u32 7, %v5163_v21  ;;  %v5194_v28 = vand.u32 7, %v5162_v23  ;;  %v5001_v32 = vld [vmem:[%s8152_s4] sm:$0x1] }
  0xec   : > { %4990 = vmatprep.mubr.f32.mxu1 %v336_v34  ;;  %v5229_v30 = vand.u32 7, %v5167_v25  ;;  %vm5369_vm5 = vcmp.eq.s32.totalorder %v7076_v1, %v5187_v26  ;;  %vm5373_vm8 = vcmp.eq.s32.totalorder %v7076_v1, %v5215_v29  ;;  %v7020_v23 = vld [vmem:[%s7250_s24 + $0x20] sm:$0xff]  ;;  %v7021_v25 = vld [vmem:[%s7250_s24 + $0x30] sm:$0xff] }
  0xed   : > { %4921 = vmatmul.mubr.f32.vlgmr.msra.gmra.mxu0 %v318_v35  ;;  %4991 = vmatmul.mubr.f32.vlgmr.msra.gmra.mxu1 %v330_v36  ;;  %vm5371_vm6 = vcmp.eq.s32.totalorder %v7076_v1, %v5201_v27  ;;  %vm5370_vm7 = vcmp.eq.s32.totalorder %v7076_v1, %v5194_v28 }
  0xee   : > { %6992 = vmatpush3.msra.mxu0 %v4998_v38  ;;  %6993 = vmatprep.mubr.msk.f32.mxu0 %vm7037_vm0, %v7036_v37  ;;  %vm5375_vm9 = vcmp.eq.s32.totalorder %v7076_v1, %v5229_v30 }
  0xef   : > { %6998 = vmatprep.mubr.msk.f32.mxu1 %vm7037_vm0, %v7036_v37  ;;  %6997 = vmatpush3.msk.msra.mxu1 %vm5081_vm2, %v5000_v13 }
  0xf0   : > { %6679 = vmatprep.subr.msk.mxu0 %vm5369_vm5, %v7035_v19  ;;  %6682 = vmatprep.subr.msk.mxu1 %vm5371_vm6, %v7035_v19 }
 0x10b   : > { %v6739_v39 = vpop.f32.mrf.mxu0  ;;  %v6774_v40 = vpop.f32.mrf.mxu1 }
 0x10d   : > { %v6740_v41 = vpop.f32.mrf.mxu0  ;;  %v6775_v43 = vpop.f32.mrf.mxu1 }
 0x10e   : > { %v6741_v46 = vadd.f32 %v6740_v41, %v6739_v39  ;;  %v6776_v47 = vadd.f32 %v6775_v43, %v6774_v40  ;;  %v5164_v40 = vadd.s32 512, %v7078_v2  ;;  %v5166_v41 = vadd.s32 768, %v7078_v2 }
 0x10f   : > { %v5171_v43 = vadd.s32 1408, %v7078_v2 }
 0x110   : > { %v4573_v51 = vadd.f32 %v6776_v47, %v6741_v46  ;;  %v5168_v46 = vadd.s32 1024, %v7078_v2  ;;  %v5170_v47 = vadd.s32 1280, %v7078_v2 }
 0x140   : > { %v6809_v42 = vpop.f32.mrf.mxu0 }
 0x142   : > { %v6844_v44 = vpop.f32.mrf.mxu1  ;;  %v6810_v45 = vpop.f32.mrf.mxu0 }
 0x143   : > { %v6811_v49 = vadd.f32 %v6810_v45, %v6809_v42  ;;  %v5169_v42 = vadd.s32 1152, %v7078_v2  ;;  %v5222_v45 = vand.u32 7, %v5166_v41  ;;  %v7024_v41 = vld [vmem:[%s7250_s24 + $0x40] sm:$0xff] }
 0x144   : > { %v6845_v50 = vpop.f32.mrf.mxu1 }
 0x145   : > { %v4643_v54 = vadd.f32 %v6811_v49, %v4573_v51  ;;  %v6846_v55 = vadd.f32 %v6845_v50, %v6844_v44  ;;  %v5208_v44 = vand.u32 7, %v5164_v40  ;;  %v5257_v49 = vand.u32 7, %v5171_v43 }
 0x146   : > { %v5173_v50 = vadd.s32 1664, %v7078_v2  ;;  %v5175_v51 = vadd.s32 1920, %v7078_v2  ;;  %vm5374_vm11 = vcmp.eq.s32.totalorder %v7076_v1, %v5222_v45 }
 0x147   : > { %v4713_v58 = vadd.f32 %v6846_v55, %v4643_v54  ;;  %vm5372_vm10 = vcmp.eq.s32.totalorder %v7076_v1, %v5208_v44  ;;  %v5172_v54 = vadd.s32 1536, %v7078_v2  ;;  %v5174_v55 = vadd.s32 1792, %v7078_v2 }
 0x148   : > { %vm5379_vm13 = vcmp.eq.s32.totalorder %v7076_v1, %v5257_v49 }
 0x149   : > { %v5264_v2 = vand.u32 7, %v5172_v54 }
 0x176   : > { %v6879_v48 = vpop.f32.mrf.mxu0 }
 0x178   : > { %v6914_v52 = vpop.f32.mrf.mxu1  ;;  %v6880_v53 = vpop.f32.mrf.mxu0 }
 0x179   : > { %v6881_v56 = vadd.f32 %v6880_v53, %v6879_v48  ;;  %v5243_v48 = vand.u32 7, %v5169_v42  ;;  %v5250_v53 = vand.u32 7, %v5170_v47 }
 0x17a   : > { %v6915_v57 = vpop.f32.mrf.mxu1 }
 0x17b   : > { %v4783_v60 = vadd.f32 %v6881_v56, %v4713_v58  ;;  %v6916_v61 = vadd.f32 %v6915_v57, %v6914_v52  ;;  %v5236_v52 = vand.u32 7, %v5168_v46  ;;  %vm5377_vm12 = vcmp.eq.s32.totalorder %v7076_v1, %v5243_v48  ;;  %v7025_v48 = vld [vmem:[%s7250_s24 + $0x48] sm:$0xff] }
 0x17c   : > { %v5271_v57 = vand.u32 7, %v5173_v50  ;;  %v5285_v58 = vand.u32 7, %v5175_v51  ;;  %vm5378_vm15 = vcmp.eq.s32.totalorder %v7076_v1, %v5250_v53  ;;  %v7026_v50 = vld [vmem:[%s7250_s24 + $0x58] sm:$0xff] }
 0x17d   : > { %v4853_v5 = vadd.f32 %v6916_v61, %v4783_v60  ;;  %vm5376_vm14 = vcmp.eq.s32.totalorder %v7076_v1, %v5236_v52  ;;  %v5278_v60 = vand.u32 7, %v5174_v55  ;;  %v8088_v61 = vsub.s32 0, %v7076_v1 }
 0x17e   : > { %vm5381_vm0 = vcmp.eq.s32.totalorder %v7076_v1, %v5271_v57  ;;  %vm5383_vm2 = vcmp.eq.s32.totalorder %v7076_v1, %v5285_v58 }
 0x1ad   : > { %v6949_v62 = vpop.f32.mrf.mxu0  ;;  %v6984_v63 = vpop.f32.mrf.mxu1 }
 0x1af   : > { %v6950_v0 = vpop.f32.mrf.mxu0  ;;  %v6985_v3 = vpop.f32.mrf.mxu1 }
 0x1b0   : > { %v6951_v6 = vadd.f32 %v6950_v0, %v6949_v62  ;;  %v6986_v10 = vadd.f32 %v6985_v3, %v6984_v63 }
 0x1b2   : > { %v4923_v7 = vadd.f32 %v6951_v6, %v4853_v5  ;;  %v7017_v6 = vld [vmem:[%s7250_s24 + $0x10] sm:$0xff] }
 0x1b4   : > { %v4993_v11 = vadd.f32 %v6986_v10, %v4923_v7 }
 0x1b6   : > { %v4997_v12 = vmul.f32 0.00048828125, %v4993_v11 }
 0x1b8   : > { %6994 = vmatmul.mubr.msk.f32.vlgmr.msra.gmra.mxu0 %vm5002_vm1, %v4997_v12 }
 0x1b9   : > { %5483 = vmatprep.mubr.f32.mxu0 %v7036_v37  ;;  %6680 = vmatpush1.msk.msra.mxu0 %vm5368_vm4, %v7035_v19  ;;  %vm5382_vm4 = vcmp.eq.s32.totalorder %v7076_v1, %v5278_v60 }
 0x1ba   : > { %6685 = vmatprep.subr.msk.mxu0 %vm5373_vm8, %v7035_v19 }
 0x278   : > { %v5072_v15 = vpop.f32.mrf.mxu0 }
 0x279   : > { %v5073_v16 = vadd.f32 %v5072_v15, %v4999_v14  ;;  %v7018_v14 = vld [vmem:[%s7250_s24 + $0x8] sm:$0xff] }
 0x27a   : > { %v6995_v17 = vpop.f32.mrf.mxu0 }
 0x27b   : > { %v5076_v18 = vmax.f32 %v5073_v16, 0.0  ;;  %v7019_v16 = vld [vmem:[%s7250_s24 + $0x18] sm:$0xff] }
 0x27d   : > { %6999 = vmatmul.mubr.msk.f32.vlgmr.msra.gmra.mxu1 %vm5077_vm3, %v5076_v18  ;;  %vm5380_vm3 = vcmp.eq.s32.totalorder %v7076_v1, %v5264_v2  ;;  %v7016_v1 = vld [vmem:[%s7250_s24] sm:$0xff] }
 0x27e   : > { %5554 = vmatprep.mubr.f32.mxu1 %v7036_v37  ;;  %6683 = vmatpush1.msk.msra.mxu1 %vm5370_vm7, %v7035_v19 }
 0x27f   : > { %6688 = vmatprep.subr.msk.mxu1 %vm5375_vm9, %v7035_v19 }
 0x33d   : > { %v5151_v33 = vpop.f32.mrf.mxu1 }
 0x33e   : > { %v5152_v34 = vadd.f32 %v5151_v33, %v5001_v32  ;;  %v7022_v32 = vld [vmem:[%s7250_s24 + $0x28] sm:$0xff] }
 0x33f   : > { %v7000_v35 = vpop.f32.mrf.mxu1 }
 0x340   : > { %v6662_v36 = vmul.f32 -1.442695, %v5152_v34  ;;  %v7023_v34 = vld [vmem:[%s7250_s24 + $0x38] sm:$0xff] }
 0x342   : > { %7012 = vpow2.f32 %v6662_v36 }
 0x34f   : > { %v7013_v38 = vpop.eup %7012 }
 0x350   : > { %v5158_v39 = vadd.f32 1.0, %v7013_v38 }
 0x352   : > { %7014 = vrcp.f32 %v5158_v39 }
 0x35f   : > { %v7015_v56 = vpop.eup %7014 }
 0x360   : > { %6681 = vmatmul.mubr.msk.f32.vlgmr.msra.gmra.mxu0 %vm5002_vm1, %v7015_v56  ;;  %6684 = vmatmul.mubr.msk.f32.vlgmr.msra.gmra.mxu1 %vm5002_vm1, %v7015_v56 }
 0x361   : > { %6686 = vmatpush1.msk.msra.mxu0 %vm5372_vm10, %v7035_v19  ;;  %6689 = vmatpush1.msk.msra.mxu1 %vm5374_vm11, %v7035_v19 }
 0x362   : > { %5625 = vmatprep.mubr.f32.mxu0 %v7036_v37  ;;  %5696 = vmatprep.mubr.f32.mxu1 %v7036_v37 }
 0x363   : > { %6691 = vmatprep.subr.msk.mxu0 %vm5377_vm12, %v7035_v19  ;;  %6694 = vmatprep.subr.msk.mxu1 %vm5379_vm13, %v7035_v19 }
 0x364   : > { %6687 = vmatmul.mubr.msk.f32.vlgmr.msra.gmra.mxu0 %vm5002_vm1, %v7015_v56  ;;  %6690 = vmatmul.mubr.msk.f32.vlgmr.msra.gmra.mxu1 %vm5002_vm1, %v7015_v56 }
 0x365   : > { %6692 = vmatpush1.msk.msra.mxu0 %vm5376_vm14, %v7035_v19  ;;  %6695 = vmatpush1.msk.msra.mxu1 %vm5378_vm15, %v7035_v19 }
 0x366   : > { %5767 = vmatprep.mubr.f32.mxu0 %v7036_v37  ;;  %5838 = vmatprep.mubr.f32.mxu1 %v7036_v37 }
 0x367   : > { %6697 = vmatprep.subr.msk.mxu0 %vm5381_vm0, %v7035_v19  ;;  %6700 = vmatprep.subr.msk.mxu1 %vm5383_vm2, %v7035_v19 }
 0x368   : > { %6693 = vmatmul.mubr.msk.f32.vlgmr.msra.gmra.mxu0 %vm5002_vm1, %v7015_v56  ;;  %6696 = vmatmul.mubr.msk.f32.vlgmr.msra.gmra.mxu1 %vm5002_vm1, %v7015_v56 }
 0x369   : > { %6698 = vmatpush1.msk.msra.mxu0 %vm5380_vm3, %v7035_v19  ;;  %6701 = vmatpush1.msk.msra.mxu1 %vm5382_vm4, %v7035_v19 }
 0x36a   : > { %5909 = vmatprep.mubr.f32.mxu0 %v7036_v37  ;;  %5980 = vmatprep.mubr.f32.mxu1 %v7036_v37 }
 0x36c   : > { %6699 = vmatmul.mubr.msk.f32.vlgmr.msra.gmra.mxu0 %vm5002_vm1, %v7015_v56  ;;  %6702 = vmatmul.mubr.msk.f32.vlgmr.msra.gmra.mxu1 %vm5002_vm1, %v7015_v56 }
 0x420   : > { %v5485_v62 = vpop.f32.mrf.mxu0  ;;  %v5556_v63 = vpop.f32.mrf.mxu1 }
 0x421   : > { %v5990_v0 = vrot.slane %v5485_v62, %v8088_v61  ;;  %v5998_v3 = vrot.slane %v5556_v63, %v8088_v61 }
 0x422   : > { %v5487_v19 = vpop.f32.mrf.mxu0  ;;  %v5558_v37 = vpop.f32.mrf.mxu1 }
 0x423   : > { %v6051_v5 = vmul.f32 %v7016_v1, %v5990_v0  ;;  %v6053_v7 = vmul.f32 %v7017_v6, %v5998_v3  ;;  %v5994_v10 = vrot.slane %v5487_v19, %v8088_v61  ;;  %v6002_v11 = vrot.slane %v5558_v37, %v8088_v61 }
 0x424   : > { %v5627_v12 = vpop.f32.mrf.mxu0  ;;  %v5698_v13 = vpop.f32.mrf.mxu1 }
 0x425   : > { %6067 = vst [vmem:[%s8097_s10] sm:$0xff] %v6051_v5  ;;  %6069 = vst [vmem:[%s8097_s10 + $0x10] sm:$0xff] %v6053_v7  ;;  %v6052_v15 = vmul.f32 %v7018_v14, %v5994_v10  ;;  %v6054_v17 = vmul.f32 %v7019_v16, %v6002_v11  ;;  %v6006_v18 = vrot.slane %v5627_v12, %v8088_v61 }
 0x426   : > { %v6014_v20 = vrot.slane %v5698_v13, %v8088_v61  ;;  %v5629_v21 = vpop.f32.mrf.mxu0  ;;  %v5700_v22 = vpop.f32.mrf.mxu1 }
 0x427   : > { %6068 = vst [vmem:[%s8097_s10 + $0x8] sm:$0xff] %v6052_v15  ;;  %6070 = vst [vmem:[%s8097_s10 + $0x18] sm:$0xff] %v6054_v17  ;;  %v6055_v24 = vmul.f32 %v7020_v23, %v6006_v18  ;;  %v6010_v27 = vrot.slane %v5629_v21, %v8088_v61  ;;  %v6018_v28 = vrot.slane %v5700_v22, %v8088_v61 }
 0x428   : > { %v6057_v26 = vmul.f32 %v7021_v25, %v6014_v20  ;;  %v5769_v29 = vpop.f32.mrf.mxu0  ;;  %v5840_v30 = vpop.f32.mrf.mxu1 }
 0x429   : > { %6071 = vst [vmem:[%s8097_s10 + $0x20] sm:$0xff] %v6055_v24  ;;  %v6056_v33 = vmul.f32 %v7022_v32, %v6010_v27  ;;  %v6058_v35 = vmul.f32 %v7023_v34, %v6018_v28  ;;  %v6022_v36 = vrot.slane %v5769_v29, %v8088_v61  ;;  %v6030_v38 = vrot.slane %v5840_v30, %v8088_v61 }
 0x42a   : > { %6073 = vst [vmem:[%s8097_s10 + $0x30] sm:$0xff] %v6057_v26  ;;  %v5771_v39 = vpop.f32.mrf.mxu0  ;;  %v5842_v40 = vpop.f32.mrf.mxu1 }
 0x42b   : > { %6072 = vst [vmem:[%s8097_s10 + $0x28] sm:$0xff] %v6056_v33  ;;  %6074 = vst [vmem:[%s8097_s10 + $0x38] sm:$0xff] %v6058_v35  ;;  %v6059_v42 = vmul.f32 %v7024_v41, %v6022_v36  ;;  %v6061_v43 = vmul.f32 %v6030_v38, %v7751_v31  ;;  %v6026_v44 = vrot.slane %v5771_v39, %v8088_v61 }
 0x42c   : > { %v6034_v45 = vrot.slane %v5842_v40, %v8088_v61  ;;  %v5911_v46 = vpop.f32.mrf.mxu0  ;;  %v5982_v47 = vpop.f32.mrf.mxu1 }
 0x42d   : > { %6075 = vst [vmem:[%s8097_s10 + $0x40] sm:$0xff] %v6059_v42  ;;  %6077 = vst [vmem:[%s8097_s10 + $0x50] sm:$0xff] %v6061_v43  ;;  %v6060_v49 = vmul.f32 %v7025_v48, %v6026_v44  ;;  %v6038_v52 = vrot.slane %v5911_v46, %v8088_v61  ;;  %v6046_v31 = vrot.slane %v5982_v47, %v8088_v61 }
 0x42e   : > { %v6062_v51 = vmul.f32 %v7026_v50, %v6034_v45  ;;  %v5913_v53 = vpop.f32.mrf.mxu0  ;;  %v5984_v54 = vpop.f32.mrf.mxu1 }
 0x42f   : > { %6076 = vst [vmem:[%s8097_s10 + $0x48] sm:$0xff] %v6060_v49  ;;  %v6063_v55 = vmul.f32 %v6038_v52, %v7980_v8  ;;  %v6065_v56 = vmul.f32 %v6046_v31, %v7983_v9  ;;  %v6042_v57 = vrot.slane %v5913_v53, %v8088_v61  ;;  %v6050_v58 = vrot.slane %v5984_v54, %v8088_v61 }
 0x430   : > { %6078 = vst [vmem:[%s8097_s10 + $0x58] sm:$0xff] %v6062_v51 }
 0x431   : > { %6079 = vst [vmem:[%s8097_s10 + $0x60] sm:$0xff] %v6063_v55  ;;  %6081 = vst [vmem:[%s8097_s10 + $0x70] sm:$0xff] %v6065_v56  ;;  %v6064_v2 = vmul.f32 %v6042_v57, %v7965_v59  ;;  %v6066_v60 = vmul.f32 %v6050_v58, %v7974_v4 }
 0x433   : > { %6080 = vst [vmem:[%s8097_s10 + $0x68] sm:$0xff] %v6064_v2  ;;  %6082 = vst [vmem:[%s8097_s10 + $0x78] sm:$0xff] %v6066_v60 }
 0x434 PF: > { %s15_s18 = sadd.s32 1, %s7033_s18  }
 0x435   : > { %p12_p4 = scmp.ge.s32.totalorder %s15_s18, 4  }
 0x437   :  { %14 = sbr.rel (!%p12_p4) target bundleno = 1 (0x1), region = 70 }

</bundles_post_ra>
